<compile_context>
chip_gen: v6e
topology: v6e:2x2x1
jax: 0.10.0
libtpu: 0.0.40
codegen_flags: <defaults>
</compile_context>

<pallas_src>
import functools

import jax
import jax.numpy as jnp
from jax import lax
from jax.experimental import pallas as pl
from jax.experimental.pallas import tpu as pltpu


def _hard_contrastive_kernel(v_ref, a_ref, row_ref, colmax_ref, colsum_ref, *,
                             bs, block_rows):
    """One tile of query rows.

    v_ref:      (2*bs, dim_p) = [v0/T ; v1/T]  (matmul dtype; temperature folded in)
    a_ref:      (2*bs, dim_p) = [a0   ; a1  ]  (matmul dtype)
    row_ref:    (block_rows, 8) f32 per-row statistics for this tile
    colmax_ref: (1, 1, bs) f32 per-tile column max of scores_easy
    colsum_ref: (1, 1, bs) f32 per-tile column sum-exp (w.r.t. the tile column max)
    """
    f32 = jnp.float32
    i = pl.program_id(0)
    r0 = pl.multiple_of(i * block_rows, block_rows)
    r1 = pl.multiple_of(bs + i * block_rows, block_rows)

    v0 = v_ref[pl.ds(r0, block_rows), :]      # (T, D)  v0 / T
    v1 = v_ref[pl.ds(r1, block_rows), :]      # (T, D)  v1 / T
    a0 = a_ref[pl.ds(r0, block_rows), :]      # (T, D)
    a1 = a_ref[pl.ds(r1, block_rows), :]      # (T, D)

    dn = (((1,), (1,)), ((), ()))             # contract the feature dim: X @ Y^T
    # V2A logits: [ scores_easy | scores_hard_v2a ]  -> (T, 2*bs), f32 accumulation.
    logits_v2a = lax.dot_general(v0, a_ref[...], dn, preferred_element_type=f32)
    se = logits_v2a[:, :bs]
    hv = logits_v2a[:, bs:]
    # A2V hard-negative block only: a0 @ (v1/T)^T -> (T, bs).
    # scores_easy.T is NOT recomputed; its column LSE is merged outside the kernel.
    ha = lax.dot_general(a0, v_ref[pl.ds(bs, bs), :], dn, preferred_element_type=f32)

    # Target / diagonal logits from per-row dots on the (T, D) operands (no iota/eye).
    diag_se = jnp.sum(v0.astype(f32) * a0.astype(f32), axis=1, keepdims=True)
    diag_hv = jnp.sum(v0.astype(f32) * a1.astype(f32), axis=1, keepdims=True)
    diag_ha = jnp.sum(a0.astype(f32) * v1.astype(f32), axis=1, keepdims=True)

    # Row-wise logsumexp; the easy-block sum-exp is reused for the [easy|hard] rows.
    m_e = jnp.max(se, axis=1, keepdims=True)
    s_e = jnp.sum(jnp.exp(se - m_e), axis=1, keepdims=True)
    m_h = jnp.maximum(m_e, jnp.max(hv, axis=1, keepdims=True))
    s_h = s_e * jnp.exp(m_e - m_h) + jnp.sum(jnp.exp(hv - m_h), axis=1, keepdims=True)
    lse_v2a_easy = jnp.log(s_e) + m_e
    lse_v2a_hard = jnp.log(s_h) + m_h

    m_a = jnp.max(ha, axis=1, keepdims=True)
    s_a = jnp.sum(jnp.exp(ha - m_a), axis=1, keepdims=True)
    lse_ha = jnp.log(s_a) + m_a

    sum_se = jnp.sum(se, axis=1, keepdims=True)      # for the EasyNeg metric

    # Pack the 7 per-row statistics into lanes 0..6 of a (T, 8) block.
    lane = lax.broadcasted_iota(jnp.int32, (block_rows, 8), 1)
    row_block = jnp.zeros((block_rows, 8), f32)
    for k, col in enumerate((lse_v2a_easy, lse_v2a_hard, lse_ha,
                             diag_se, diag_hv, diag_ha, sum_se)):
        row_block = jnp.where(lane == k, col, row_block)
    row_ref[...] = row_block

    # Per-tile column statistics of scores_easy (for the A2V-easy column LSE).
    c_max = jnp.max(se, axis=0, keepdims=True)                      # (1, bs)
    c_sum = jnp.sum(jnp.exp(se - c_max), axis=0, keepdims=True)     # (1, bs)
    colmax_ref[...] = c_max.reshape(1, 1, bs)
    colsum_ref[...] = c_sum.reshape(1, 1, bs)


def _usable_vmem_bytes():
    cap = None
    try:
        cap = getattr(pltpu.get_tpu_info(), "vmem_capacity_bytes", None)
    except Exception:
        cap = None
    if not cap:
        cap = 64 << 20          # conservative (v7x-sized) default if the query fails
    return (3 * int(cap)) // 4  # ~48 MiB on v7x, ~96 MiB on v5e/v6e


def _prep(emb, scale, dim_p, out_dtype, normalize):
    """normalize -> fold scale -> aug-contiguous (2*bs, dim_p) -> cast, one HBM sweep."""
    bs, n_aug, dim = emb.shape
    e = jnp.asarray(emb, jnp.float32)
    if normalize:
        # x * rsqrt(max(||x||^2, eps^2)) == F.normalize(x, p=2, eps=1e-12)
        e = e * lax.rsqrt(jnp.maximum(jnp.sum(e * e, axis=2, keepdims=True), 1e-24))
    if scale != 1.0:
        e = e * jnp.float32(scale)
    e = jnp.swapaxes(e, 0, 1).reshape(n_aug * bs, dim)
    if dim_p != dim:
        e = jnp.pad(e, ((0, 0), (0, dim_p - dim)))   # zero cols are exact for dots
    return e.astype(out_dtype)


def hard_contrastive_loss(video_emb, audio_emb, *, easy_coeff=1.0, hard_coeff=1.0,
                          temperature=0.07, normalize=True, block_rows=None,
                          matmul_dtype=jnp.bfloat16):
    """video_emb, audio_emb: (bs, 2, dim). Returns (total_loss, metrics dict)."""
    bs, n_aug, dim = video_emb.shape
    assert n_aug == 2, "Within-modal contrastive loss requires 2 augmentations."
    assert audio_emb.shape == (bs, 2, dim)
    assert temperature > 0.0
    assert bs % 8 == 0, "bs must be a multiple of 8 (pad the batch before calling)"

    dim_p = max(128, ((dim + 127) // 128) * 128)
    mm_bytes = jnp.dtype(matmul_dtype).itemsize

    # Temperature is folded into the video side only, so se, hv and ha all carry 1/T.
    v_flat = _prep(video_emb, 1.0 / float(temperature), dim_p, matmul_dtype, normalize)
    a_flat = _prep(audio_emb, 1.0, dim_p, matmul_dtype, normalize)

    # ---- generation-aware tile sizing --------------------------------------------
    budget = _usable_vmem_bytes()
    resident = 2 * (2 * bs) * dim_p * mm_bytes          # v + a, single-buffered

    def tile_cost(br):
        # resident operands + f32 logits/exp temporaries + LHS slices + slack
        return resident + 10 * br * bs * 4 + 2 * br * dim_p * mm_bytes + (4 << 20)

    if block_rows is None:
        cands = [c for c in (1024, 512, 256, 128, 64, 32, 16, 8) if bs % c == 0]
        block_rows = cands[-1]
        for c in cands:                                  # largest that fits the budget
            if tile_cost(c) <= budget:
                block_rows = c
                break
    assert bs % block_rows == 0 and block_rows % 8 == 0
    num_tiles = bs // block_rows

    # TODO(synk): for very large bs*dim the resident operands alone can exceed the VMEM
    # budget; a flash-style online-LSE tiling of the 2*bs logits axis would be needed.
    vmem_limit = int(min(max(tile_cost(block_rows), 32 << 20), budget))

    kernel = functools.partial(_hard_contrastive_kernel, bs=bs, block_rows=block_rows)

    out_shapes = (jax.ShapeDtypeStruct((bs, 8), jnp.float32),
                  jax.ShapeDtypeStruct((num_tiles, 1, bs), jnp.float32),
                  jax.ShapeDtypeStruct((num_tiles, 1, bs), jnp.float32))
    out_specs = (pl.BlockSpec((block_rows, 8), lambda i: (i, 0)),
                 pl.BlockSpec((1, 1, bs), lambda i: (i, 0, 0)),
                 pl.BlockSpec((1, 1, bs), lambda i: (i, 0, 0)))

    def build(single_buffer):
        if single_buffer:
            # Constant block index -> fetched once; Buffered(1) removes the useless
            # second buffer (the big VMEM win on v7x).
            in_specs = [pl.BlockSpec((2 * bs, dim_p), lambda i: (0, 0),
                                     pipeline_mode=pl.Buffered(1)),
                        pl.BlockSpec((2 * bs, dim_p), lambda i: (0, 0),
                                     pipeline_mode=pl.Buffered(1))]
        else:
            in_specs = [pl.BlockSpec((2 * bs, dim_p), lambda i: (0, 0)),
                        pl.BlockSpec((2 * bs, dim_p), lambda i: (0, 0))]
        return pl.pallas_call(
            kernel,
            out_shape=out_shapes,
            grid_spec=pltpu.PrefetchScalarGridSpec(
                num_scalar_prefetch=0,
                grid=(num_tiles,),
                in_specs=in_specs,
                out_specs=out_specs),
            compiler_params=pltpu.CompilerParams(
                # Every grid step is independent (disjoint output blocks, no scratch),
                # so the row-tile axis can be split across v7x's two TensorCores.
                dimension_semantics=("parallel",),
                vmem_limit_bytes=vmem_limit),
        )

    try:
        row_stats, col_max_t, col_sum_t = build(True)(v_flat, a_flat)
    except Exception:
        # Fallback for environments where pipeline_mode=pl.Buffered is unavailable.
        row_stats, col_max_t, col_sum_t = build(False)(v_flat, a_flat)

    # ---- O(bs) finalisation (plain XLA) -------------------------------------------
    cm = col_max_t[:, 0, :]                                    # (num_tiles, bs)
    cs = col_sum_t[:, 0, :]
    g_max = jnp.max(cm, axis=0)                                # (bs,)
    g_sum = jnp.sum(cs * jnp.exp(cm - g_max[None, :]), axis=0)
    lse_a2v_easy = jnp.log(g_sum) + g_max                      # column LSE of scores_easy

    lse_v2a_easy = row_stats[:, 0]
    lse_v2a_hard = row_stats[:, 1]
    lse_ha = row_stats[:, 2]
    diag_se = row_stats[:, 3]
    diag_hv = row_stats[:, 4]
    diag_ha = row_stats[:, 5]
    sum_se_rows = row_stats[:, 6]

    lse_a2v_hard = jnp.logaddexp(lse_a2v_easy, lse_ha)         # LSE of [se^T | ha] rows

    loss_v2a_easy = jnp.mean(lse_v2a_easy - diag_se)
    loss_a2v_easy = jnp.mean(lse_a2v_easy - diag_se)
    loss_v2a_hard = jnp.mean(lse_v2a_hard - diag_se)
    loss_a2v_hard = jnp.mean(lse_a2v_hard - diag_se)

    total_loss = ((loss_v2a_easy + loss_a2v_easy) * (0.5 * float(easy_coeff))
                  + (loss_v2a_hard + loss_a2v_hard) * (0.5 * float(hard_coeff)))

    neg_denom = float(bs * (bs - 1)) if bs > 1 else 1.0        # guard bs == 1
    metrics = {
        'Scores/Pos': jnp.mean(diag_se),
        'Scores/HardNeg-V2A': jnp.mean(diag_hv),
        'Scores/HardNeg-A2V': jnp.mean(diag_ha),
        'Scores/EasyNeg': (jnp.sum(sum_se_rows) - jnp.sum(diag_se)) / neg_denom,
        'Loss/V2A-Easy': loss_v2a_easy,
        'Loss/A2V-Easy': loss_a2v_easy,
        'Loss/V2A-Hard': loss_v2a_hard,
        'Loss/A2V-Hard': loss_a2v_hard,
    }
    return total_loss, metrics


def _reference(video_emb, audio_emb, easy_coeff=1.0, hard_coeff=1.0,
               temperature=0.07, normalize=True):
    """Pure-JAX (f32) reference mirroring the PyTorch forward."""
    bs = video_emb.shape[0]
    if normalize:
        def n(x):
            ss = jnp.sum(x * x, axis=2, keepdims=True)
            return x * lax.rsqrt(jnp.maximum(ss, 1e-24))
        video_emb, audio_emb = n(video_emb), n(audio_emb)
    v0, v1 = video_emb[:, 0], video_emb[:, 1]
    a0, a1 = audio_emb[:, 0], audio_emb[:, 1]
    se = v0 @ a0.T / temperature
    shv = jnp.concatenate([se, v0 @ a1.T / temperature], axis=1)
    sha = jnp.concatenate([se.T, a0 @ v1.T / temperature], axis=1)

    def ce(logits):
        idx = jnp.arange(bs)
        lse = jax.scipy.special.logsumexp(logits, axis=1)
        return jnp.mean(lse - logits[idx, idx])

    losses = {'V2A-Easy': ce(se), 'A2V-Easy': ce(se.T),
              'V2A-Hard': ce(shv), 'A2V-Hard': ce(sha)}
    total = ((losses['V2A-Easy'] + losses['A2V-Easy']) / 2.0 * easy_coeff
             + (losses['V2A-Hard'] + losses['A2V-Hard']) / 2.0 * hard_coeff)
    metrics = {
        'Scores/Pos': jnp.mean(jnp.diag(se)),
        'Scores/HardNeg-V2A': jnp.mean(jnp.diag(shv[:, bs:])),
        'Scores/HardNeg-A2V': jnp.mean(jnp.diag(sha[:, bs:])),
        'Scores/EasyNeg': (jnp.sum(se) - jnp.sum(jnp.diag(se))) / (bs * (bs - 1)),
    }
    for k in losses:
        metrics[f'Loss/{k}'] = losses[k]
    return total, metrics


if __name__ == "__main__":
    key = jax.random.PRNGKey(0)
    k1, k2 = jax.random.split(key)
    bs, dim = 64, 128
    video_emb = jax.random.normal(k1, (bs, 2, dim), dtype=jnp.float32)
    audio_emb = jax.random.normal(k2, (bs, 2, dim), dtype=jnp.float32)

    # Multi-tile path (4 row tiles -> exercises the cross-tile column-LSE merge).
    total_loss, metrics = hard_contrastive_loss(video_emb, audio_emb, block_rows=16)
    total_loss = jax.block_until_ready(total_loss)
    jax.block_until_ready(metrics)

    ref_total, ref_metrics = _reference(video_emb, audio_emb)
    # bf16 MXU operands vs. an f32 XLA reference -> slightly looser tolerance.
    tol = dict(rtol=1e-2, atol=1e-2)
    assert jnp.allclose(total_loss, ref_total, **tol), (total_loss, ref_total)
    for k, v in ref_metrics.items():
        assert jnp.allclose(metrics[k], v, **tol), (k, metrics[k], v)

    # Auto tile-selection path (single tile at this size).
    total2, _ = hard_contrastive_loss(video_emb, audio_emb)
    total2 = jax.block_until_ready(total2)
    assert jnp.allclose(total2, ref_total, **tol), (total2, ref_total)

    print("KERNEL_OK")
</pallas_src>

<mosaic_0001>
module attributes {stable_mosaic.version = 11 : i64} {
  func.func @_hard_contrastive_kernel(%arg0: i32, %arg1: memref<128x128xbf16, #tpu.memory_space<vmem>>, %arg2: memref<128x128xbf16, #tpu.memory_space<vmem>>, %arg3: memref<16x8xf32, #tpu.memory_space<vmem>>, %arg4: memref<1x1x64xf32, #tpu.memory_space<vmem>>, %arg5: memref<1x1x64xf32, #tpu.memory_space<vmem>>) attributes {dimension_semantics = [#tpu.dimension_semantics<parallel>], iteration_bounds = array<i64: 4>, scalar_prefetch = 0 : i64, scratch_operands = 0 : i64, tpu.core_type = #tpu.core_type<tc>, window_params = [{pipeline_mode = #tpu.pipeline_mode<synchronous>, transform_indices = @transform_0, window_bounds = array<i64: 128, 128>}, {pipeline_mode = #tpu.pipeline_mode<synchronous>, transform_indices = @transform_1, window_bounds = array<i64: 128, 128>}, {transform_indices = @transform_2, window_bounds = array<i64: 16, 8>}, {transform_indices = @transform_3, window_bounds = array<i64: 1, 1, 64>}, {transform_indices = @transform_4, window_bounds = array<i64: 1, 1, 64>}]} {
    %c16_i32 = arith.constant 16 : i32
    %0 = arith.muli %arg0, %c16_i32 : i32
    %1 = tpu.assume_multiple %0, 16 : i32
    %c16_i32_0 = arith.constant 16 : i32
    %2 = arith.muli %arg0, %c16_i32_0 : i32
    %c64_i32 = arith.constant 64 : i32
    %3 = arith.addi %c64_i32, %2 : i32
    %4 = tpu.assume_multiple %3, 16 : i32
    %5 = arith.index_cast %1 : i32 to index
    %c0 = arith.constant 0 : index
    %6 = vector.load %arg1[%5, %c0] : memref<128x128xbf16, #tpu.memory_space<vmem>>, vector<16x128xbf16>
    %7 = arith.index_cast %4 : i32 to index
    %c0_1 = arith.constant 0 : index
    %8 = vector.load %arg1[%7, %c0_1] : memref<128x128xbf16, #tpu.memory_space<vmem>>, vector<16x128xbf16>
    %9 = arith.index_cast %1 : i32 to index
    %c0_2 = arith.constant 0 : index
    %10 = vector.load %arg2[%9, %c0_2] : memref<128x128xbf16, #tpu.memory_space<vmem>>, vector<16x128xbf16>
    %11 = arith.index_cast %4 : i32 to index
    %c0_3 = arith.constant 0 : index
    %12 = vector.load %arg2[%11, %c0_3] : memref<128x128xbf16, #tpu.memory_space<vmem>>, vector<16x128xbf16>
    %c0_4 = arith.constant 0 : index
    %c0_5 = arith.constant 0 : index
    %13 = vector.load %arg2[%c0_4, %c0_5] : memref<128x128xbf16, #tpu.memory_space<vmem>>, vector<128x128xbf16>
    %cst = arith.constant dense<0.000000e+00> : vector<16x128xf32>
    %14 = tpu.matmul %6, %13, %cst {dimension_numbers = #tpu.dot_dimension_numbers<[1], [1], [0], [0], [0, 0, 1, 0], [], []>} : vector<16x128xbf16>, vector<128x128xbf16>, vector<16x128xf32> -> vector<16x128xf32>
    %15 = vector.extract_strided_slice %14 {offsets = [0, 0], sizes = [16, 64], strides = [1, 1]} : vector<16x128xf32> to vector<16x64xf32>
    %16 = vector.extract_strided_slice %14 {offsets = [0, 64], sizes = [16, 64], strides = [1, 1]} : vector<16x128xf32> to vector<16x64xf32>
    %c64 = arith.constant 64 : index
    %c0_6 = arith.constant 0 : index
    %17 = vector.load %arg1[%c64, %c0_6] : memref<128x128xbf16, #tpu.memory_space<vmem>>, vector<64x128xbf16>
    %cst_7 = arith.constant dense<0.000000e+00> : vector<16x64xf32>
    %18 = tpu.matmul %10, %17, %cst_7 {dimension_numbers = #tpu.dot_dimension_numbers<[1], [1], [0], [0], [0, 0, 1, 0], [], []>} : vector<16x128xbf16>, vector<64x128xbf16>, vector<16x64xf32> -> vector<16x64xf32>
    %19 = arith.extf %6 : vector<16x128xbf16> to vector<16x128xf32>
    %20 = arith.extf %10 : vector<16x128xbf16> to vector<16x128xf32>
    %21 = arith.mulf %19, %20 : vector<16x128xf32>
    %cst_8 = arith.constant dense<0.000000e+00> : vector<16xf32>
    %22 = vector.multi_reduction <add>, %21, %cst_8 [1] : vector<16x128xf32> to vector<16xf32>
    %23 = vector.shape_cast %22 : vector<16xf32> to vector<16x1xf32>
    %24 = arith.extf %6 : vector<16x128xbf16> to vector<16x128xf32>
    %25 = arith.extf %12 : vector<16x128xbf16> to vector<16x128xf32>
    %26 = arith.mulf %24, %25 : vector<16x128xf32>
    %cst_9 = arith.constant dense<0.000000e+00> : vector<16xf32>
    %27 = vector.multi_reduction <add>, %26, %cst_9 [1] : vector<16x128xf32> to vector<16xf32>
    %28 = vector.shape_cast %27 : vector<16xf32> to vector<16x1xf32>
    %29 = arith.extf %10 : vector<16x128xbf16> to vector<16x128xf32>
    %30 = arith.extf %8 : vector<16x128xbf16> to vector<16x128xf32>
    %31 = arith.mulf %29, %30 : vector<16x128xf32>
    %cst_10 = arith.constant dense<0.000000e+00> : vector<16xf32>
    %32 = vector.multi_reduction <add>, %31, %cst_10 [1] : vector<16x128xf32> to vector<16xf32>
    %33 = vector.shape_cast %32 : vector<16xf32> to vector<16x1xf32>
    %cst_11 = arith.constant dense<0xFF800000> : vector<16xf32>
    %34 = vector.multi_reduction <maximumf>, %15, %cst_11 [1] : vector<16x64xf32> to vector<16xf32>
    %35 = vector.shape_cast %34 : vector<16xf32> to vector<16x1xf32>
    %36 = vector.broadcast %35 : vector<16x1xf32> to vector<16x64xf32>
    %37 = arith.subf %15, %36 : vector<16x64xf32>
    %38 = math.exp %37 : vector<16x64xf32>
    %cst_12 = arith.constant dense<0.000000e+00> : vector<16xf32>
    %39 = vector.multi_reduction <add>, %38, %cst_12 [1] : vector<16x64xf32> to vector<16xf32>
    %40 = vector.shape_cast %39 : vector<16xf32> to vector<16x1xf32>
    %cst_13 = arith.constant dense<0xFF800000> : vector<16xf32>
    %41 = vector.multi_reduction <maximumf>, %16, %cst_13 [1] : vector<16x64xf32> to vector<16xf32>
    %42 = vector.shape_cast %41 : vector<16xf32> to vector<16x1xf32>
    %43 = arith.maximumf %35, %42 : vector<16x1xf32>
    %44 = arith.subf %35, %43 : vector<16x1xf32>
    %45 = math.exp %44 : vector<16x1xf32>
    %46 = arith.mulf %40, %45 : vector<16x1xf32>
    %47 = vector.broadcast %43 : vector<16x1xf32> to vector<16x64xf32>
    %48 = arith.subf %16, %47 : vector<16x64xf32>
    %49 = math.exp %48 : vector<16x64xf32>
    %cst_14 = arith.constant dense<0.000000e+00> : vector<16xf32>
    %50 = vector.multi_reduction <add>, %49, %cst_14 [1] : vector<16x64xf32> to vector<16xf32>
    %51 = vector.shape_cast %50 : vector<16xf32> to vector<16x1xf32>
    %52 = arith.addf %46, %51 : vector<16x1xf32>
    %53 = math.log %40 : vector<16x1xf32>
    %54 = arith.addf %53, %35 : vector<16x1xf32>
    %55 = math.log %52 : vector<16x1xf32>
    %56 = arith.addf %55, %43 : vector<16x1xf32>
    %cst_15 = arith.constant dense<0xFF800000> : vector<16xf32>
    %57 = vector.multi_reduction <maximumf>, %18, %cst_15 [1] : vector<16x64xf32> to vector<16xf32>
    %58 = vector.shape_cast %57 : vector<16xf32> to vector<16x1xf32>
    %59 = vector.broadcast %58 : vector<16x1xf32> to vector<16x64xf32>
    %60 = arith.subf %18, %59 : vector<16x64xf32>
    %61 = math.exp %60 : vector<16x64xf32>
    %cst_16 = arith.constant dense<0.000000e+00> : vector<16xf32>
    %62 = vector.multi_reduction <add>, %61, %cst_16 [1] : vector<16x64xf32> to vector<16xf32>
    %63 = vector.shape_cast %62 : vector<16xf32> to vector<16x1xf32>
    %64 = math.log %63 : vector<16x1xf32>
    %65 = arith.addf %64, %58 : vector<16x1xf32>
    %cst_17 = arith.constant dense<0.000000e+00> : vector<16xf32>
    %66 = vector.multi_reduction <add>, %15, %cst_17 [1] : vector<16x64xf32> to vector<16xf32>
    %67 = vector.shape_cast %66 : vector<16xf32> to vector<16x1xf32>
    %68 = tpu.iota {dimensions = array<i32: 1>} : vector<16x8xi32>
    %cst_18 = arith.constant 0.000000e+00 : f32
    %69 = vector.broadcast %cst_18 : f32 to vector<16x8xf32>
    %c0_i32 = arith.constant 0 : i32
    %70 = vector.broadcast %c0_i32 : i32 to vector<16x8xi32>
    %71 = arith.cmpi eq, %68, %70 : vector<16x8xi32>
    %72 = vector.shape_cast %54 : vector<16x1xf32> to vector<16x1xf32>
    %73 = vector.broadcast %72 : vector<16x1xf32> to vector<16x8xf32>
    %74 = arith.select %71, %73, %69 : vector<16x8xi1>, vector<16x8xf32>
    %c1_i32 = arith.constant 1 : i32
    %75 = vector.broadcast %c1_i32 : i32 to vector<16x8xi32>
    %76 = arith.cmpi eq, %68, %75 : vector<16x8xi32>
    %77 = vector.shape_cast %56 : vector<16x1xf32> to vector<16x1xf32>
    %78 = vector.broadcast %77 : vector<16x1xf32> to vector<16x8xf32>
    %79 = arith.select %76, %78, %74 : vector<16x8xi1>, vector<16x8xf32>
    %c2_i32 = arith.constant 2 : i32
    %80 = vector.broadcast %c2_i32 : i32 to vector<16x8xi32>
    %81 = arith.cmpi eq, %68, %80 : vector<16x8xi32>
    %82 = vector.shape_cast %65 : vector<16x1xf32> to vector<16x1xf32>
    %83 = vector.broadcast %82 : vector<16x1xf32> to vector<16x8xf32>
    %84 = arith.select %81, %83, %79 : vector<16x8xi1>, vector<16x8xf32>
    %c3_i32 = arith.constant 3 : i32
    %85 = vector.broadcast %c3_i32 : i32 to vector<16x8xi32>
    %86 = arith.cmpi eq, %68, %85 : vector<16x8xi32>
    %87 = vector.shape_cast %23 : vector<16x1xf32> to vector<16x1xf32>
    %88 = vector.broadcast %87 : vector<16x1xf32> to vector<16x8xf32>
    %89 = arith.select %86, %88, %84 : vector<16x8xi1>, vector<16x8xf32>
    %c4_i32 = arith.constant 4 : i32
    %90 = vector.broadcast %c4_i32 : i32 to vector<16x8xi32>
    %91 = arith.cmpi eq, %68, %90 : vector<16x8xi32>
    %92 = vector.shape_cast %28 : vector<16x1xf32> to vector<16x1xf32>
    %93 = vector.broadcast %92 : vector<16x1xf32> to vector<16x8xf32>
    %94 = arith.select %91, %93, %89 : vector<16x8xi1>, vector<16x8xf32>
    %c5_i32 = arith.constant 5 : i32
    %95 = vector.broadcast %c5_i32 : i32 to vector<16x8xi32>
    %96 = arith.cmpi eq, %68, %95 : vector<16x8xi32>
    %97 = vector.shape_cast %33 : vector<16x1xf32> to vector<16x1xf32>
    %98 = vector.broadcast %97 : vector<16x1xf32> to vector<16x8xf32>
    %99 = arith.select %96, %98, %94 : vector<16x8xi1>, vector<16x8xf32>
    %c6_i32 = arith.constant 6 : i32
    %100 = vector.broadcast %c6_i32 : i32 to vector<16x8xi32>
    %101 = arith.cmpi eq, %68, %100 : vector<16x8xi32>
    %102 = vector.shape_cast %67 : vector<16x1xf32> to vector<16x1xf32>
    %103 = vector.broadcast %102 : vector<16x1xf32> to vector<16x8xf32>
    %104 = arith.select %101, %103, %99 : vector<16x8xi1>, vector<16x8xf32>
    %c0_19 = arith.constant 0 : index
    %c0_20 = arith.constant 0 : index
    %105 = vector.load %arg3[%c0_19, %c0_20] : memref<16x8xf32, #tpu.memory_space<vmem>>, vector<16x8xf32>
    tpu.vector_store %arg3[%c0_19, %c0_20], %104 {strides = array<i32>} : memref<16x8xf32, #tpu.memory_space<vmem>>, vector<16x8xf32>,
    %cst_21 = arith.constant dense<0xFF800000> : vector<64xf32>
    %106 = vector.multi_reduction <maximumf>, %15, %cst_21 [0] : vector<16x64xf32> to vector<64xf32>
    %107 = vector.shape_cast %106 : vector<64xf32> to vector<1x64xf32>
    %108 = vector.broadcast %107 : vector<1x64xf32> to vector<16x64xf32>
    %109 = arith.subf %15, %108 : vector<16x64xf32>
    %110 = math.exp %109 : vector<16x64xf32>
    %cst_22 = arith.constant dense<0.000000e+00> : vector<64xf32>
    %111 = vector.multi_reduction <add>, %110, %cst_22 [0] : vector<16x64xf32> to vector<64xf32>
    %112 = vector.shape_cast %111 : vector<64xf32> to vector<1x64xf32>
    %113 = vector.shape_cast %107 : vector<1x64xf32> to vector<1x1x64xf32>
    %c0_23 = arith.constant 0 : index
    %c0_24 = arith.constant 0 : index
    %c0_25 = arith.constant 0 : index
    %114 = vector.load %arg4[%c0_23, %c0_24, %c0_25] : memref<1x1x64xf32, #tpu.memory_space<vmem>>, vector<1x1x64xf32>
    tpu.vector_store %arg4[%c0_23, %c0_24, %c0_25], %113 {strides = array<i32>} : memref<1x1x64xf32, #tpu.memory_space<vmem>>, vector<1x1x64xf32>,
    %115 = vector.shape_cast %112 : vector<1x64xf32> to vector<1x1x64xf32>
    %c0_26 = arith.constant 0 : index
    %c0_27 = arith.constant 0 : index
    %c0_28 = arith.constant 0 : index
    %116 = vector.load %arg5[%c0_26, %c0_27, %c0_28] : memref<1x1x64xf32, #tpu.memory_space<vmem>>, vector<1x1x64xf32>
    tpu.vector_store %arg5[%c0_26, %c0_27, %c0_28], %115 {strides = array<i32>} : memref<1x1x64xf32, #tpu.memory_space<vmem>>, vector<1x1x64xf32>,
    return
  }
  func.func @transform_0(%arg0: i32) -> (i32, i32) {
    %c0_i32 = arith.constant 0 : i32
    %c0_i32_0 = arith.constant 0 : i32
    %c0_i32_1 = arith.constant 0 : i32
    return %c0_i32, %c0_i32_0 : i32, i32
  }
  func.func @transform_1(%arg0: i32) -> (i32, i32) {
    %c0_i32 = arith.constant 0 : i32
    %c0_i32_0 = arith.constant 0 : i32
    %c0_i32_1 = arith.constant 0 : i32
    return %c0_i32, %c0_i32_0 : i32, i32
  }
  func.func @transform_2(%arg0: i32) -> (i32, i32) {
    %c0_i32 = arith.constant 0 : i32
    %c0_i32_0 = arith.constant 0 : i32
    return %arg0, %c0_i32 : i32, i32
  }
  func.func @transform_3(%arg0: i32) -> (i32, i32, i32) {
    %c0_i32 = arith.constant 0 : i32
    %c0_i32_0 = arith.constant 0 : i32
    %c0_i32_1 = arith.constant 0 : i32
    return %arg0, %c0_i32, %c0_i32_0 : i32, i32, i32
  }
  func.func @transform_4(%arg0: i32) -> (i32, i32, i32) {
    %c0_i32 = arith.constant 0 : i32
    %c0_i32_0 = arith.constant 0 : i32
    %c0_i32_1 = arith.constant 0 : i32
    return %arg0, %c0_i32, %c0_i32_0 : i32, i32, i32
  }
}

module attributes {stable_mosaic.version = 11 : i64} {
  func.func @_hard_contrastive_kernel(%arg0: i32, %arg1: memref<128x128xbf16, #tpu.memory_space<vmem>>, %arg2: memref<128x128xbf16, #tpu.memory_space<vmem>>, %arg3: memref<16x8xf32, #tpu.memory_space<vmem>>, %arg4: memref<1x1x64xf32, #tpu.memory_space<vmem>>, %arg5: memref<1x1x64xf32, #tpu.memory_space<vmem>>) attributes {dimension_semantics = [#tpu.dimension_semantics<parallel>], iteration_bounds = array<i64: 4>, scalar_prefetch = 0 : i64, scratch_operands = 0 : i64, tpu.core_type = #tpu.core_type<tc>, window_params = [{pipeline_mode = #tpu.pipeline_mode<synchronous>, transform_indices = @transform_0, window_bounds = array<i64: 128, 128>}, {pipeline_mode = #tpu.pipeline_mode<synchronous>, transform_indices = @transform_1, window_bounds = array<i64: 128, 128>}, {transform_indices = @transform_2, window_bounds = array<i64: 16, 8>}, {transform_indices = @transform_3, window_bounds = array<i64: 1, 1, 64>}, {transform_indices = @transform_4, window_bounds = array<i64: 1, 1, 64>}]} {
    %c16_i32 = arith.constant 16 : i32
    %0 = arith.muli %arg0, %c16_i32 : i32
    %1 = tpu.assume_multiple %0, 16 : i32
    %c16_i32_0 = arith.constant 16 : i32
    %2 = arith.muli %arg0, %c16_i32_0 : i32
    %c64_i32 = arith.constant 64 : i32
    %3 = arith.addi %c64_i32, %2 : i32
    %4 = tpu.assume_multiple %3, 16 : i32
    %5 = arith.index_cast %1 : i32 to index
    %c0 = arith.constant 0 : index
    %6 = vector.load %arg1[%5, %c0] : memref<128x128xbf16, #tpu.memory_space<vmem>>, vector<16x128xbf16>
    %7 = arith.index_cast %4 : i32 to index
    %c0_1 = arith.constant 0 : index
    %8 = vector.load %arg1[%7, %c0_1] : memref<128x128xbf16, #tpu.memory_space<vmem>>, vector<16x128xbf16>
    %9 = arith.index_cast %1 : i32 to index
    %c0_2 = arith.constant 0 : index
    %10 = vector.load %arg2[%9, %c0_2] : memref<128x128xbf16, #tpu.memory_space<vmem>>, vector<16x128xbf16>
    %11 = arith.index_cast %4 : i32 to index
    %c0_3 = arith.constant 0 : index
    %12 = vector.load %arg2[%11, %c0_3] : memref<128x128xbf16, #tpu.memory_space<vmem>>, vector<16x128xbf16>
    %c0_4 = arith.constant 0 : index
    %c0_5 = arith.constant 0 : index
    %13 = vector.load %arg2[%c0_4, %c0_5] : memref<128x128xbf16, #tpu.memory_space<vmem>>, vector<128x128xbf16>
    %cst = arith.constant dense<0.000000e+00> : vector<16x128xf32>
    %14 = tpu.matmul %6, %13, %cst {dimension_numbers = #tpu.dot_dimension_numbers<[1], [1], [0], [0], [0, 0, 1, 0], [], []>} : vector<16x128xbf16>, vector<128x128xbf16>, vector<16x128xf32> -> vector<16x128xf32>
    %15 = vector.extract_strided_slice %14 {offsets = [0, 0], sizes = [16, 64], strides = [1, 1]} : vector<16x128xf32> to vector<16x64xf32>
    %16 = vector.extract_strided_slice %14 {offsets = [0, 64], sizes = [16, 64], strides = [1, 1]} : vector<16x128xf32> to vector<16x64xf32>
    %c64 = arith.constant 64 : index
    %c0_6 = arith.constant 0 : index
    %17 = vector.load %arg1[%c64, %c0_6] : memref<128x128xbf16, #tpu.memory_space<vmem>>, vector<64x128xbf16>
    %cst_7 = arith.constant dense<0.000000e+00> : vector<16x64xf32>
    %18 = tpu.matmul %10, %17, %cst_7 {dimension_numbers = #tpu.dot_dimension_numbers<[1], [1], [0], [0], [0, 0, 1, 0], [], []>} : vector<16x128xbf16>, vector<64x128xbf16>, vector<16x64xf32> -> vector<16x64xf32>
    %19 = arith.extf %6 : vector<16x128xbf16> to vector<16x128xf32>
    %20 = arith.extf %10 : vector<16x128xbf16> to vector<16x128xf32>
    %21 = arith.mulf %19, %20 : vector<16x128xf32>
    %cst_8 = arith.constant dense<0.000000e+00> : vector<16xf32>
    %22 = vector.multi_reduction <add>, %21, %cst_8 [1] : vector<16x128xf32> to vector<16xf32>
    %23 = vector.shape_cast %22 : vector<16xf32> to vector<16x1xf32>
    %24 = arith.extf %6 : vector<16x128xbf16> to vector<16x128xf32>
    %25 = arith.extf %12 : vector<16x128xbf16> to vector<16x128xf32>
    %26 = arith.mulf %24, %25 : vector<16x128xf32>
    %cst_9 = arith.constant dense<0.000000e+00> : vector<16xf32>
    %27 = vector.multi_reduction <add>, %26, %cst_9 [1] : vector<16x128xf32> to vector<16xf32>
    %28 = vector.shape_cast %27 : vector<16xf32> to vector<16x1xf32>
    %29 = arith.extf %10 : vector<16x128xbf16> to vector<16x128xf32>
    %30 = arith.extf %8 : vector<16x128xbf16> to vector<16x128xf32>
    %31 = arith.mulf %29, %30 : vector<16x128xf32>
    %cst_10 = arith.constant dense<0.000000e+00> : vector<16xf32>
    %32 = vector.multi_reduction <add>, %31, %cst_10 [1] : vector<16x128xf32> to vector<16xf32>
    %33 = vector.shape_cast %32 : vector<16xf32> to vector<16x1xf32>
    %cst_11 = arith.constant dense<0xFF800000> : vector<16xf32>
    %34 = vector.multi_reduction <maximumf>, %15, %cst_11 [1] : vector<16x64xf32> to vector<16xf32>
    %35 = vector.shape_cast %34 : vector<16xf32> to vector<16x1xf32>
    %36 = vector.broadcast %35 : vector<16x1xf32> to vector<16x64xf32>
    %37 = arith.subf %15, %36 : vector<16x64xf32>
    %38 = math.exp %37 : vector<16x64xf32>
    %cst_12 = arith.constant dense<0.000000e+00> : vector<16xf32>
    %39 = vector.multi_reduction <add>, %38, %cst_12 [1] : vector<16x64xf32> to vector<16xf32>
    %40 = vector.shape_cast %39 : vector<16xf32> to vector<16x1xf32>
    %cst_13 = arith.constant dense<0xFF800000> : vector<16xf32>
    %41 = vector.multi_reduction <maximumf>, %16, %cst_13 [1] : vector<16x64xf32> to vector<16xf32>
    %42 = vector.shape_cast %41 : vector<16xf32> to vector<16x1xf32>
    %43 = arith.maximumf %35, %42 : vector<16x1xf32>
    %44 = arith.subf %35, %43 : vector<16x1xf32>
    %45 = math.exp %44 : vector<16x1xf32>
    %46 = arith.mulf %40, %45 : vector<16x1xf32>
    %47 = vector.broadcast %43 : vector<16x1xf32> to vector<16x64xf32>
    %48 = arith.subf %16, %47 : vector<16x64xf32>
    %49 = math.exp %48 : vector<16x64xf32>
    %cst_14 = arith.constant dense<0.000000e+00> : vector<16xf32>
    %50 = vector.multi_reduction <add>, %49, %cst_14 [1] : vector<16x64xf32> to vector<16xf32>
    %51 = vector.shape_cast %50 : vector<16xf32> to vector<16x1xf32>
    %52 = arith.addf %46, %51 : vector<16x1xf32>
    %53 = math.log %40 : vector<16x1xf32>
    %54 = arith.addf %53, %35 : vector<16x1xf32>
    %55 = math.log %52 : vector<16x1xf32>
    %56 = arith.addf %55, %43 : vector<16x1xf32>
    %cst_15 = arith.constant dense<0xFF800000> : vector<16xf32>
    %57 = vector.multi_reduction <maximumf>, %18, %cst_15 [1] : vector<16x64xf32> to vector<16xf32>
    %58 = vector.shape_cast %57 : vector<16xf32> to vector<16x1xf32>
    %59 = vector.broadcast %58 : vector<16x1xf32> to vector<16x64xf32>
    %60 = arith.subf %18, %59 : vector<16x64xf32>
    %61 = math.exp %60 : vector<16x64xf32>
    %cst_16 = arith.constant dense<0.000000e+00> : vector<16xf32>
    %62 = vector.multi_reduction <add>, %61, %cst_16 [1] : vector<16x64xf32> to vector<16xf32>
    %63 = vector.shape_cast %62 : vector<16xf32> to vector<16x1xf32>
    %64 = math.log %63 : vector<16x1xf32>
    %65 = arith.addf %64, %58 : vector<16x1xf32>
    %cst_17 = arith.constant dense<0.000000e+00> : vector<16xf32>
    %66 = vector.multi_reduction <add>, %15, %cst_17 [1] : vector<16x64xf32> to vector<16xf32>
    %67 = vector.shape_cast %66 : vector<16xf32> to vector<16x1xf32>
    %68 = tpu.iota {dimensions = array<i32: 1>} : vector<16x8xi32>
    %cst_18 = arith.constant 0.000000e+00 : f32
    %69 = vector.broadcast %cst_18 : f32 to vector<16x8xf32>
    %c0_i32 = arith.constant 0 : i32
    %70 = vector.broadcast %c0_i32 : i32 to vector<16x8xi32>
    %71 = arith.cmpi eq, %68, %70 : vector<16x8xi32>
    %72 = vector.shape_cast %54 : vector<16x1xf32> to vector<16x1xf32>
    %73 = vector.broadcast %72 : vector<16x1xf32> to vector<16x8xf32>
    %74 = arith.select %71, %73, %69 : vector<16x8xi1>, vector<16x8xf32>
    %c1_i32 = arith.constant 1 : i32
    %75 = vector.broadcast %c1_i32 : i32 to vector<16x8xi32>
    %76 = arith.cmpi eq, %68, %75 : vector<16x8xi32>
    %77 = vector.shape_cast %56 : vector<16x1xf32> to vector<16x1xf32>
    %78 = vector.broadcast %77 : vector<16x1xf32> to vector<16x8xf32>
    %79 = arith.select %76, %78, %74 : vector<16x8xi1>, vector<16x8xf32>
    %c2_i32 = arith.constant 2 : i32
    %80 = vector.broadcast %c2_i32 : i32 to vector<16x8xi32>
    %81 = arith.cmpi eq, %68, %80 : vector<16x8xi32>
    %82 = vector.shape_cast %65 : vector<16x1xf32> to vector<16x1xf32>
    %83 = vector.broadcast %82 : vector<16x1xf32> to vector<16x8xf32>
    %84 = arith.select %81, %83, %79 : vector<16x8xi1>, vector<16x8xf32>
    %c3_i32 = arith.constant 3 : i32
    %85 = vector.broadcast %c3_i32 : i32 to vector<16x8xi32>
    %86 = arith.cmpi eq, %68, %85 : vector<16x8xi32>
    %87 = vector.shape_cast %23 : vector<16x1xf32> to vector<16x1xf32>
    %88 = vector.broadcast %87 : vector<16x1xf32> to vector<16x8xf32>
    %89 = arith.select %86, %88, %84 : vector<16x8xi1>, vector<16x8xf32>
    %c4_i32 = arith.constant 4 : i32
    %90 = vector.broadcast %c4_i32 : i32 to vector<16x8xi32>
    %91 = arith.cmpi eq, %68, %90 : vector<16x8xi32>
    %92 = vector.shape_cast %28 : vector<16x1xf32> to vector<16x1xf32>
    %93 = vector.broadcast %92 : vector<16x1xf32> to vector<16x8xf32>
    %94 = arith.select %91, %93, %89 : vector<16x8xi1>, vector<16x8xf32>
    %c5_i32 = arith.constant 5 : i32
    %95 = vector.broadcast %c5_i32 : i32 to vector<16x8xi32>
    %96 = arith.cmpi eq, %68, %95 : vector<16x8xi32>
    %97 = vector.shape_cast %33 : vector<16x1xf32> to vector<16x1xf32>
    %98 = vector.broadcast %97 : vector<16x1xf32> to vector<16x8xf32>
    %99 = arith.select %96, %98, %94 : vector<16x8xi1>, vector<16x8xf32>
    %c6_i32 = arith.constant 6 : i32
    %100 = vector.broadcast %c6_i32 : i32 to vector<16x8xi32>
    %101 = arith.cmpi eq, %68, %100 : vector<16x8xi32>
    %102 = vector.shape_cast %67 : vector<16x1xf32> to vector<16x1xf32>
    %103 = vector.broadcast %102 : vector<16x1xf32> to vector<16x8xf32>
    %104 = arith.select %101, %103, %99 : vector<16x8xi1>, vector<16x8xf32>
    %c0_19 = arith.constant 0 : index
    %c0_20 = arith.constant 0 : index
    %105 = vector.load %arg3[%c0_19, %c0_20] : memref<16x8xf32, #tpu.memory_space<vmem>>, vector<16x8xf32>
    tpu.vector_store %arg3[%c0_19, %c0_20], %104 {strides = array<i32>} : memref<16x8xf32, #tpu.memory_space<vmem>>, vector<16x8xf32>,
    %cst_21 = arith.constant dense<0xFF800000> : vector<64xf32>
    %106 = vector.multi_reduction <maximumf>, %15, %cst_21 [0] : vector<16x64xf32> to vector<64xf32>
    %107 = vector.shape_cast %106 : vector<64xf32> to vector<1x64xf32>
    %108 = vector.broadcast %107 : vector<1x64xf32> to vector<16x64xf32>
    %109 = arith.subf %15, %108 : vector<16x64xf32>
    %110 = math.exp %109 : vector<16x64xf32>
    %cst_22 = arith.constant dense<0.000000e+00> : vector<64xf32>
    %111 = vector.multi_reduction <add>, %110, %cst_22 [0] : vector<16x64xf32> to vector<64xf32>
    %112 = vector.shape_cast %111 : vector<64xf32> to vector<1x64xf32>
    %113 = vector.shape_cast %107 : vector<1x64xf32> to vector<1x1x64xf32>
    %c0_23 = arith.constant 0 : index
    %c0_24 = arith.constant 0 : index
    %c0_25 = arith.constant 0 : index
    %114 = vector.load %arg4[%c0_23, %c0_24, %c0_25] : memref<1x1x64xf32, #tpu.memory_space<vmem>>, vector<1x1x64xf32>
    tpu.vector_store %arg4[%c0_23, %c0_24, %c0_25], %113 {strides = array<i32>} : memref<1x1x64xf32, #tpu.memory_space<vmem>>, vector<1x1x64xf32>,
    %115 = vector.shape_cast %112 : vector<1x64xf32> to vector<1x1x64xf32>
    %c0_26 = arith.constant 0 : index
    %c0_27 = arith.constant 0 : index
    %c0_28 = arith.constant 0 : index
    %116 = vector.load %arg5[%c0_26, %c0_27, %c0_28] : memref<1x1x64xf32, #tpu.memory_space<vmem>>, vector<1x1x64xf32>
    tpu.vector_store %arg5[%c0_26, %c0_27, %c0_28], %115 {strides = array<i32>} : memref<1x1x64xf32, #tpu.memory_space<vmem>>, vector<1x1x64xf32>,
    return
  }
  func.func @transform_0(%arg0: i32) -> (i32, i32) {
    %c0_i32 = arith.constant 0 : i32
    %c0_i32_0 = arith.constant 0 : i32
    %c0_i32_1 = arith.constant 0 : i32
    return %c0_i32, %c0_i32_0 : i32, i32
  }
  func.func @transform_1(%arg0: i32) -> (i32, i32) {
    %c0_i32 = arith.constant 0 : i32
    %c0_i32_0 = arith.constant 0 : i32
    %c0_i32_1 = arith.constant 0 : i32
    return %c0_i32, %c0_i32_0 : i32, i32
  }
  func.func @transform_2(%arg0: i32) -> (i32, i32) {
    %c0_i32 = arith.constant 0 : i32
    %c0_i32_0 = arith.constant 0 : i32
    return %arg0, %c0_i32 : i32, i32
  }
  func.func @transform_3(%arg0: i32) -> (i32, i32, i32) {
    %c0_i32 = arith.constant 0 : i32
    %c0_i32_0 = arith.constant 0 : i32
    %c0_i32_1 = arith.constant 0 : i32
    return %arg0, %c0_i32, %c0_i32_0 : i32, i32, i32
  }
  func.func @transform_4(%arg0: i32) -> (i32, i32, i32) {
    %c0_i32 = arith.constant 0 : i32
    %c0_i32_0 = arith.constant 0 : i32
    %c0_i32_1 = arith.constant 0 : i32
    return %arg0, %c0_i32, %c0_i32_0 : i32, i32, i32
  }
}

</mosaic_0001>

<bundles_post_ra>
// kernel: tpu_custom_call.1
= control target key start
LH: loop header
LB: loop body
LE: loop exit
PB: predicated region body
PF: predicated region fallthrough
CT: control target
= control target key end

     0   :  { %10 = vsyncpa [#allocation3], 0  ;;  %s1432_s0 = inlined_call_operand.hbm [shape: bf16[128,128], index: 0, kind: input, shape index: {}]   ;;  %s1433_s1 = inlined_call_operand.hbm [shape: bf16[128,128], index: 1, kind: input, shape index: {}]   ;;  %s1434_s2 = inlined_call_operand.vmem [shape: f32[64,8], index: 2, kind: output, shape index: {0}]   ;;  %s1435_s3 = inlined_call_operand.hbm [shape: f32[4,1,64], index: 3, kind: output, shape index: {1}]   ;;  %s1436_s4 = inlined_call_operand.hbm [shape: f32[4,1,64], index: 4, kind: output, shape index: {2}]  }
   0x1   :  { %11 = vsyncpa [#allocation6], 0 }
   0x2   :  { %12 = vsyncpa [#allocation4], 0 }
   0x3   :  { %14 = vsyncpa [#allocation4 + $0x1], 0 }
   0x4   :  { %15 = vsyncpa [#allocation9], 0 }
   0x5   :  { %17 = vsyncpa [#allocation9 + $0x1], 0  ;;  %s1173_s15 = smov 0   ;;  %s1175_s16 = smov 0  }
   0x6   :  { %s1177_s17 = smov 0   ;;  %s1179_s18 = smov 0  }
   0x7 LB: > { %s1194_s19 = sadd.s32 4294967295, %s1137_s18   ;;  %s783_s20 = sadd.s32 4294967294, %s1137_s18   ;;  %s1137_s18 = sphi %s1179_s18, %s1450_s18   ;;  %s1133_s17 = sphi %s1177_s17, %s1449_s17   ;;  %s1129_s16 = sphi %s1175_s16, %s1448_s16   ;;  %s1125_s15 = sphi %s1173_s15, %s1447_s15  }
   0x8   : > { %s1198_s21 = sadd.s32 1, %s1137_s18   ;;  %s98_s22 = sadd.s32 1, %s1133_s17 }
   0x9   : > { %s95_s23 = ssub.s32 %s1137_s18, %s1198_s21  ;;  %p108_p0 = scmp.ne.s32.totalorder %s1133_s17, %s1129_s16 }
   0xa   : > { %p96_p1 = scmp.eq.s32.totalorder %s95_s23, 0  ;;  %p109_p2 = scmp.eq.s32.totalorder %s1194_s19, 3 }
   0xb   : > { %p114_p3 = scmp.ne.s32.totalorder %s1129_s16, %s1125_s15  ;;  %p115_p4 = scmp.eq.s32.totalorder %s783_s20, 3 }
   0xc   : > { %s1209_s24 = scalar_select %p96_p1, %s1133_s17, %s98_s22  }
   0xd   : > { %p1211_p5 = por %p109_p2, %p108_p0  ;;  %p1215_p6 = por %p115_p4, %p114_p3 }
   0xe   : > { %p784_p7 = scmp.ge.s32.totalorder %s1137_s18, 1  ;;  %p148_p8 = scmp.lt.s32.totalorder %s1137_s18, 5 }
   0xf   : > { %s1439_s26 = scalar_select %p1215_p6, 1, 0 }
  0x10   : > { %p1437_p9 = scmp.eq.s32.totalorder %s1194_s19, 0  ;;  %p1222_p10 = pnand %p784_p7, %p148_p8 }
  0x11   : > { %s1139_s28 = smov [#allocation2]   ;;  %s1140_s5 = smov [#allocation5]  }
  0x12   : > { %s160_s29 = sshll.u32 %s1139_s28, 4  ;;  %p881_p11 = pneg %p1222_p10  ;;  %s161_s29 = int_to_ptr.vmem [resolvable:$true] %s160_s29 }
  0x13   : > { %s173_s6 = sshll.u32 %s1140_s5, 4  ;;  %s998_s7 = scalar_lea.vmem %s161_s29, 1024  ;;  %s174_s6 = int_to_ptr.vmem [resolvable:$true] %s173_s6 }
  0x14   : > { %p1230_p12 = pnand %p1437_p9, %p881_p11  ;;  %p999_p0 = scmp.ne.s32.totalorder %s161_s29, %s998_s7 }
  0x15   : > { %p1006_p3 = scmp.lt.s32.totalorder %s161_s29, %s161_s29  ;;  %p1007_p4 = scmp.lt.s32.totalorder %s998_s7, %s998_s7 }
  0x16   : > { %p989_p13 = pneg %p1230_p12 }
  0x17   : > { %p1008_p7 = por %p1007_p4, %p1006_p3 }
  0x18   : > { %p1001_p1 = pnand %p999_p0, %p989_p13 }
  0x1a   : > { %p1002_p2 = pneg %p1001_p1 }
  0x1c   : > { %p1009_p8 = pnand %p1008_p7, %p1002_p2 }
  0x1e   : > { %1012 = shalt.err (!%p1009_p8)
}
  0x1f   : > { %s1141_s8 = smov 64   ;;  %s1142_s9 = smov 4  }
  0x20   : > { %884 = dma.hbm_to_vmem [thread:$0]  (!%p1230_p12), %s1432_s0, 1024, %s161_s29, [#allocation3], %s1141_s8, %s1141_s8, %s1142_s9  }
  0x21   : > { %s1024_s12 = scalar_lea.vmem %s174_s6, 1024  ;;  %p1032_p9 = scmp.lt.s32.totalorder %s174_s6, %s174_s6 }
  0x22   : > { %p1025_p11 = scmp.ne.s32.totalorder %s174_s6, %s1024_s12  ;;  %p1033_p6 = scmp.lt.s32.totalorder %s1024_s12, %s1024_s12 }
  0x24   : > { %p1027_p0 = pnand %p1025_p11, %p989_p13  ;;  %p1034_p3 = por %p1033_p6, %p1032_p9 }
  0x26   : > { %p1028_p1 = pneg %p1027_p0 }
  0x28   : > { %p1035_p2 = pnand %p1034_p3, %p1028_p1 }
  0x2a   : > { %1038 = shalt.err (!%p1035_p2)
}
  0x2b   : > { %887 = dma.hbm_to_vmem [thread:$0]  (!%p1230_p12), %s1433_s1, 1024, %s174_s6, [#allocation6], %s1141_s8, %s1141_s8, %s1142_s9  }
  0x2c   : > { %189 = sbr.rel (%p1222_p10) target bundleno = 761 (0x2f9), region = 28  ;;  %p1442_p4 = scmp.eq.s32.totalorder (!%p1222_p10), %s1194_s19, 0 }
  0x31   : > { %1108 = dma.done.wait (%p1442_p4), [#allocation3], 1024   ;;  %p1443_p13 = pmov %p1442_p4 }
  0x32   : > { %p1444_p7 = pmov %p1442_p4 }
  0x33   : > { %1110 = vsyncadd (%p1443_p13), [#allocation3], 4294966272 }
  0x34   : > { %1112 = dma.done.wait (%p1444_p7), [#allocation6], 1024   ;;  %p1445_p6 = pmov %p1442_p4 }
  0x35   : > { %v1143_v0 = vmov 0.0   ;;  %vm1144_vm0 = vmmov 0   ;;  %v939_v1 = vld [vmem:[#allocation5 + $0x38] sm:$0xff]   ;;  %v940_v2 = vld [vmem:[#allocation5 + $0x30] sm:$0xff]   ;;  %v941_v5 = vld [vmem:[#allocation5 + $0x28] sm:$0xff]   ;;  %s1263_s20 = sshll.u32 %s1194_s19, 4 }
  0x36   : > { %1114 = vsyncadd (%p1445_p6), [#allocation6], 4294966272  ;;  %837 = vmatprep.subr.bf16.mxu0 %v1143_v0  ;;  %857 = vmatprep.subr.bf16.mxu1 %v1143_v0  ;;  %v945_v3 = vld [vmem:[#allocation2 + $0x38] sm:$0xff]   ;;  %v947_v4 = vld [vmem:[#allocation2 + $0x30] sm:$0xff]   ;;  %s231_s22 = sshra.s32 %s1263_s20, 3  ;;  %vm467_vm1 = vcmask 523264  }
  0x37   : > { %853 = vmatprep.mubr.msk.bf16.mxu0 %vm1144_vm0, %v1143_v0  ;;  %865 = vmatprep.mubr.msk.bf16.mxu1 %vm1144_vm0, %v1143_v0  ;;  %v949_v6 = vld [vmem:[#allocation2 + $0x28] sm:$0xff]   ;;  %v942_v7 = vld [vmem:[#allocation5 + $0x20] sm:$0xff]   ;;  %s793_s23 = sshll.u32 %s231_s22, 2  ;;  %v943_v9 = vld [vmem:[#allocation5 + $0x18] sm:$0xff]   ;;  %vm486_vm2 = vcmask 1048064   ;;  %s1291_s29 = sand.u32 1, %s1129_s16  }
  0x38   : > { %838 = vmatpush3.bf16.xpose.msra.mxu0 %v939_v1  ;;  %858 = vmatpush3.bf16.xpose.msra.mxu1 %v945_v3  ;;  %v951_v8 = vld [vmem:[#allocation2 + $0x20] sm:$0xff]   ;;  %s244_s27 = scalar_lea.vmem [#allocation5], %s793_s23  ;;  %v944_v11 = vld [vmem:[#allocation5 + $0x10] sm:$0xff]   ;;  %v946_v12 = vld [vmem:[#allocation5 + $0x8] sm:$0xff]   ;;  %s234_s28 = scalar_lea.vmem [#allocation2], %s793_s23  ;;  %vm615_vm3 = vcmask 516096  }
  0x39   : > { %839 = vmatprep.subr.bf16.mxu0 %v1143_v0  ;;  %859 = vmatprep.subr.bf16.mxu1 %v1143_v0  ;;  %v1266_v10 = vld [vmem:[%s244_s27] sm:$0xff]   ;;  %s215_s30 = scalar_lea.vmem [#allocation7], %s1291_s29  ;;  %s221_s5 = scalar_lea.vmem [#allocation8], %s1291_s29 }
  0x3a   : > { %v948_v13 = vld [vmem:[#allocation5] sm:$0xff]   ;;  %s1145_s6 = smov 64   ;;  %s230_s7 = sadd.s32 64, %s1263_s20 }
  0x3b   : > { %v1269_v14 = vld [vmem:[%s234_s28] sm:$0xff]   ;;  %s237_s8 = sshra.s32 %s230_s7, 3  ;;  %s644_s12 = sshll.u32 %s215_s30, 4  ;;  %s645_s12 = int_to_ptr.vmem [resolvable:$true] %s644_s12 }
  0x3c   : > { %s794_s9 = sshll.u32 %s237_s8, 2  ;;  %s1350_s13 = sshll.u32 %s221_s5, 4  ;;  %s658_s13 = int_to_ptr.vmem [resolvable:$true] %s1350_s13 }
  0x3d   : > { %s248_s10 = scalar_lea.vmem [#allocation5], %s794_s9  ;;  %s240_s11 = scalar_lea.vmem [#allocation2], %s794_s9 }
  0x3e   : > { %s642_s23 = scalar_lea.hbm %s1435_s3, %s1263_s20  ;;  %s624_s27 = scalar_lea.sflag [#allocation4], %s1291_s29 }
  0x3f   : > { %s1039_s28 = scalar_lea.vmem %s645_s12, 16 }
  0x40   : > { %840 = vmatpush3.bf16.xpose.msra.mxu0 %v940_v2  ;;  %860 = vmatpush3.bf16.xpose.msra.mxu1 %v947_v4  ;;  %p1040_p9 = scmp.ne.s32.totalorder %s645_s12, %s1039_s28 }
  0x41   : > { %841 = vmatprep.subr.bf16.mxu0 %v1143_v0  ;;  %861 = vmatprep.subr.bf16.mxu1 %v1143_v0 }
  0x42   : > { %p1041_p10 = pnand %p1040_p9, %p1211_p5 }
  0x44   : > { %p1042_p12 = pneg %p1041_p10 }
  0x48   : > { %842 = vmatpush3.bf16.xpose.msra.mxu0 %v941_v5  ;;  %862 = vmatpush3.bf16.xpose.msra.mxu1 %v949_v6 }
  0x49   : > { %843 = vmatprep.subr.bf16.mxu0 %v1143_v0  ;;  %863 = vmatprep.subr.bf16.mxu1 %v1143_v0 }
  0x50   : > { %844 = vmatpush3.bf16.xpose.msra.mxu0 %v942_v7  ;;  %864 = vmatpush3.bf16.xpose.msra.mxu1 %v951_v8 }
  0x51   : > { %845 = vmatprep.subr.bf16.mxu0 %v1143_v0 }
  0x57   : > { %866 = vmatmul.mubr.bf16.vlgmr.msra.gmra.mxu1 %v1266_v10 }
  0x58   : > { %846 = vmatpush3.bf16.xpose.msra.mxu0 %v943_v9 }
  0x59   : > { %847 = vmatprep.subr.bf16.mxu0 %v1143_v0 }
  0x60   : > { %848 = vmatpush3.bf16.xpose.msra.mxu0 %v944_v11 }
  0x61   : > { %849 = vmatprep.subr.bf16.mxu0 %v1143_v0 }
  0x68   : > { %850 = vmatpush3.bf16.xpose.msra.mxu0 %v946_v12 }
  0x69   : > { %851 = vmatprep.subr.bf16.mxu0 %v1143_v0 }
  0x70   : > { %852 = vmatpush3.bf16.xpose.msra.mxu0 %v948_v13 }
  0x77   : > { %854 = vmatmul.mubr.bf16.vlgmr.msra.gmra.mxu0 %v1269_v14 }
 0x117   : > { %v1272_v15 = vpop.f32.mrf.mxu1 }
 0x118   : > { %v537_v27 = vsel %vm467_vm1, %v1272_v15, -inf }
 0x119   : > { %v867_v16 = vpop.f32.mrf.mxu1 }
 0x11b   : > { %v1274_v17 = vpop.f32.mrf.mxu1 }
 0x11c   : > { %v540_v31 = vsel %vm467_vm1, %v1274_v17, -inf }
 0x11d   : > { %v868_v18 = vpop.f32.mrf.mxu1 }
 0x137   : > { %v1276_v19 = vpop.f32.mrf.mxu0 }
 0x138   : > { %v468_v20 = vsel %vm467_vm1, %v1276_v19, -inf  ;;  %v487_v23 = vsel %vm486_vm2, %v1276_v19, -inf }
 0x139   : > { %469 = vmax.xlane.f32.xlu0 %v468_v20  ;;  %v855_v21 = vpop.f32.mrf.mxu0 }
 0x13a   : > { %v441_v21 = vunpack.c.l.bf16 %v1269_v14 }
 0x13b   : > { %v1280_v22 = vpop.f32.mrf.mxu0 }
 0x13c   : > { %v471_v24 = vsel %vm467_vm1, %v1280_v22, -inf  ;;  %v490_v29 = vsel %vm486_vm2, %v1280_v22, -inf }
 0x13d   : > { %488 = vmax.xlane.f32.xlu0 %v487_v23  ;;  %472 = vmax.xlane.f32.xlu1 %v471_v24  ;;  %v593_v25 = vmax.f32 %v468_v20, %v471_v24  ;;  %v856_v26 = vpop.f32.mrf.mxu0  ;;  %v820_v23 = vld [vmem:[%s248_s10] sm:$0xff]  }
 0x13f   : > { %v594_v28 = vrot.slane %v593_v25, 4 }
 0x141   : > { %v595_v30 = vmax.f32 %v593_v25, %v594_v28  ;;  %538 = vmax.xlane.f32.xlu0 %v537_v27  ;;  %491 = vmax.xlane.f32.xlu1 %v490_v29  ;;  %v821_v27 = vunpack.c.l.bf16 %v820_v23  ;;  %v442_v29 = vunpack.c.h.bf16 %v1269_v14 }
 0x143   : > { %v596_v32 = vrot.slane %v595_v30, 2 }
 0x145   : > { %v597_v33 = vmax.f32 %v595_v30, %v596_v32  ;;  %541 = vmax.xlane.f32.xlu1 %v540_v31  ;;  %v444_v30 = vunpack.c.h.bf16 %v1266_v10  ;;  %v816_v31 = vld [vmem:[%s240_s11] sm:$0xff]  }
 0x147   : > { %v598_v34 = vrot.slane %v597_v33, 1 }
 0x149   : > { %v599_v35 = vmax.f32 %v597_v33, %v598_v34  ;;  %v453_v33 = vmul.f32 %v821_v27, %v441_v21  ;;  %v817_v34 = vunpack.c.l.bf16 %v816_v31 }
 0x14b   : > { %v600_v36 = vsub.f32 %v1276_v19, %v599_v35  ;;  %v601_v37 = vsub.f32 %v1280_v22, %v599_v35  ;;  %616 = vst.msk [vmem:[%s215_s30] sm:$0x1] %vm615_vm3, %v599_v35  ;;  %v446_v35 = vmul.f32 %v444_v30, %v442_v29 }
 0x14d   : > { %v602_v38 = vmul.f32 1.442695, %v600_v36  ;;  %v604_v39 = vmul.f32 1.442695, %v601_v37  ;;  %v822_v36 = vunpack.c.h.bf16 %v820_v23 }
 0x14f   : > { %955 = vpow2.f32 %v602_v38  ;;  %v454_v14 = vmul.f32 %v822_v36, %v442_v29  ;;  %v818_v38 = vunpack.c.h.bf16 %v816_v31 }
 0x150   : > { %957 = vpow2.f32 %v604_v39  ;;  %v561_v39 = vsel %vm467_vm1, %v1276_v19, 0.0 }
 0x15c   : > { %v956_v40 = vpop.eup %955 }
 0x15d   : > { %v958_v41 = vpop.eup %957  ;;  %v606_v42 = vsel %vm467_vm1, %v956_v40, 0.0  ;;  %v564_v40 = vsel %vm467_vm1, %v1280_v22, 0.0 }
 0x15e   : > { %v607_v43 = vsel %vm467_vm1, %v958_v41, 0.0 }
 0x15f   : > { %v608_v44 = vadd.f32 %v607_v43, %v606_v42 }
 0x161   : > { %v609_v45 = vrot.slane %v608_v44, 4 }
 0x163   : > { %v610_v46 = vadd.f32 %v609_v45, %v608_v44 }
 0x165   : > { %v611_v47 = vrot.slane %v610_v46, 2 }
 0x167   : > { %v612_v48 = vadd.f32 %v611_v47, %v610_v46 }
 0x169   : > { %v613_v49 = vrot.slane %v612_v48, 1 }
 0x16b   : > { %v614_v50 = vadd.f32 %v613_v49, %v612_v48 }
 0x16d   : > { %617 = vst.msk [vmem:[%s221_s5] sm:$0x1] %vm615_vm3, %v614_v50 }
 0x1c2   : > { %v1305_v51 = vpop.xlane.xlu0 %469 }
 0x1c3   : > { %v474_v1 = vsub.f32 %v1276_v19, %v1305_v51 }
 0x1c5   : > { %v476_v2 = vmul.f32 1.442695, %v474_v1 }
 0x1c6   : > { %v489_v52 = vpop.xlane.xlu0 %488  ;;  %v1307_v53 = vpop.xlane.xlu1 %472 }
 0x1c7   : > { %v1310_v54 = vmax.f32 %v1305_v51, %v489_v52  ;;  %v475_v63 = vsub.f32 %v1280_v22, %v1307_v53 }
 0x1c9   : > { %v503_v55 = vsub.f32 %v1276_v19, %v1310_v54  ;;  %v478_v0 = vmul.f32 1.442695, %v475_v63 }
 0x1ca   : > { %v492_v56 = vpop.xlane.xlu1 %491  ;;  %v1325_v7 = vpop.xlane.xlu0 %538 }
 0x1cb   : > { %v505_v57 = vmul.f32 1.442695, %v503_v55  ;;  %v1315_v58 = vmax.f32 %v1307_v53, %v492_v56  ;;  %v543_v8 = vsub.f32 %v1272_v15, %v1325_v7  ;;  %v443_v15 = vunpack.c.l.bf16 %v1266_v10 }
 0x1cc   : > { %v462_v10 = vmul.f32 %v818_v38, %v444_v30 }
 0x1cd   : > { %959 = vpow2.f32 %v505_v57  ;;  %v504_v59 = vsub.f32 %v1280_v22, %v1315_v58  ;;  %v545_v11 = vmul.f32 1.442695, %v543_v8  ;;  %v445_v26 = vmul.f32 %v443_v15, %v441_v21 }
 0x1ce   : > { %v1329_v9 = vpop.xlane.xlu1 %541  ;;  %v461_v37 = vmul.f32 %v817_v34, %v443_v15 }
 0x1cf   : > { %v507_v60 = vmul.f32 1.442695, %v504_v59  ;;  %v544_v12 = vsub.f32 %v1274_v17, %v1329_v9 }
 0x1d1   : > { %961 = vpow2.f32 %v507_v60  ;;  %v547_v13 = vmul.f32 1.442695, %v544_v12 }
 0x1d2   : > { %963 = vpow2.f32 %v478_v0 }
 0x1d3   : > { %965 = vpow2.f32 %v476_v2 }
 0x1d4   : > { %967 = vpow2.f32 %v545_v11 }
 0x1d5   : > { %969 = vpow2.f32 %v547_v13 }
 0x1da   : > { %v960_v61 = vpop.eup %959 }
 0x1db   : > { %511 = vrot.lane.b32.xlu0 %v960_v61, %s1145_s6 }
 0x1de   : > { %v962_v62 = vpop.eup %961 }
 0x1df   : > { %513 = vrot.lane.b32.xlu1 %v962_v62, %s1145_s6  ;;  %v964_v3 = vpop.eup %963  ;;  %s1146_s6 = smov [#allocation7]  }
 0x1e0   : > { %v483_v4 = vsel %vm467_vm1, %v964_v3, 0.0  ;;  %v966_v5 = vpop.eup %965  ;;  %s1043_s7 = sshll.u32 %s1146_s6, 4  ;;  %s1044_s7 = int_to_ptr.vmem [resolvable:$false] %s1043_s7 }
 0x1e1   : > { %v480_v6 = vsel %vm467_vm1, %v966_v5, 0.0  ;;  %v968_v20 = vpop.eup %967  ;;  %s1045_s8 = scalar_lea.vmem %s1044_s7, 32  ;;  %p1046_p8 = scmp.lt.s32.totalorder %s645_s12, %s1044_s7 }
 0x1e2   : > { %v549_v17 = vsel %vm467_vm1, %v968_v20, 0.0  ;;  %v970_v28 = vpop.eup %969  ;;  %p1047_p11 = scmp.lt.s32.totalorder %s1045_s8, %s1039_s28 }
 0x1e3   : > { %v552_v32 = vsel %vm467_vm1, %v970_v28, 0.0 }
 0x1e4   : > { %p1048_p0 = por %p1047_p11, %p1046_p8 }
 0x1e6   : > { %p1049_p1 = pnand %p1048_p0, %p1042_p12 }
 0x1fa   : > { %484 = vadd.xlane.f32.xlu0 %v483_v4 }
 0x203   : > { %481 = vadd.xlane.f32.xlu1 %v480_v6 }
 0x24d   : > { %v512_v16 = vpop.permute.xlu0 %511 }
 0x24e   : > { %v517_v18 = vsel %vm467_vm1, %v512_v16, 0.0 }
 0x24f   : > { %518 = vadd.xlane.f32.xlu0 %v517_v18 }
 0x251   : > { %v514_v24 = vpop.permute.xlu1 %513 }
 0x252   : > { %v520_v25 = vsel %vm467_vm1, %v514_v24, 0.0 }
 0x253   : > { %550 = vadd.xlane.f32.xlu0 %v549_v17  ;;  %521 = vadd.xlane.f32.xlu1 %v520_v25 }
 0x257   : > { %447 = vadd.xlane.f32.xlu0 %v445_v26  ;;  %553 = vadd.xlane.f32.xlu1 %v552_v32 }
 0x25b   : > { %455 = vadd.xlane.f32.xlu0 %v453_v33  ;;  %449 = vadd.xlane.f32.xlu1 %v446_v35 }
 0x25f   : > { %463 = vadd.xlane.f32.xlu0 %v461_v37  ;;  %457 = vadd.xlane.f32.xlu1 %v454_v14 }
 0x263   : > { %562 = vadd.xlane.f32.xlu0 %v561_v39  ;;  %465 = vadd.xlane.f32.xlu1 %v462_v10 }
 0x267   : > { %565 = vadd.xlane.f32.xlu1 %v564_v40 }
 0x268   : > { %1052 = shalt.err (!%p1049_p1)
}
 0x269   : > { %s1053_s30 = scalar_lea.hbm %s642_s23, 16  ;;  %s1057_s10 = scalar_lea.hbm %s1435_s3, 64 }
 0x26a   : > { %p1054_p3 = scmp.ne.s32.totalorder %s642_s23, %s1053_s30  ;;  %p1058_p13 = scmp.lt.s32.totalorder %s642_s23, %s1435_s3 }
 0x26b   : > { %p1059_p7 = scmp.lt.s32.totalorder %s1057_s10, %s1053_s30 }
 0x26c   : > { %p1055_p2 = pnand %p1054_p3, %p1211_p5 }
 0x26d   : > { %p1060_p6 = por %p1059_p7, %p1058_p13 }
 0x26e   : > { %p1056_p4 = pneg %p1055_p2 }
 0x270   : > { %p1061_p9 = pnand %p1060_p6, %p1056_p4 }
 0x272   : > { %1064 = shalt.err (!%p1061_p9)
}
 0x273   : > { %877 = dma.vmem_to_hbm [thread:$0]  (%p1211_p5), %s645_s12, 16, %s642_s23, %s624_s27  }
 0x274   : > { %s655_s6 = scalar_lea.hbm %s1436_s4, %s1263_s20  ;;  %s628_s7 = scalar_lea.sflag [#allocation9], %s1291_s29 }
 0x275   : > { %s1065_s8 = scalar_lea.vmem %s658_s13, 16  ;;  %s1147_s30 = smov [#allocation8]  }
 0x276   : > { %p1066_p10 = scmp.ne.s32.totalorder %s658_s13, %s1065_s8  ;;  %s1069_s5 = sshll.u32 %s1147_s30, 4  ;;  %s1070_s5 = int_to_ptr.vmem [resolvable:$false] %s1069_s5 }
 0x277   : > { %s1071_s9 = scalar_lea.vmem %s1070_s5, 32  ;;  %p1072_p11 = scmp.lt.s32.totalorder %s658_s13, %s1070_s5 }
 0x278   : > { %p1067_p12 = pnand %p1066_p10, %p1211_p5  ;;  %p1073_p0 = scmp.lt.s32.totalorder %s1071_s9, %s1065_s8 }
 0x27a   : > { %p1068_p8 = pneg %p1067_p12  ;;  %p1074_p1 = por %p1073_p0, %p1072_p11 }
 0x27c   : > { %p1075_p3 = pnand %p1074_p1, %p1068_p8 }
 0x27e   : > { %1078 = shalt.err (!%p1075_p3)
}
 0x27f   : > { %s1079_s12 = scalar_lea.hbm %s655_s6, 16  ;;  %s1083_s23 = scalar_lea.hbm %s1436_s4, 64 }
 0x280   : > { %p1080_p2 = scmp.ne.s32.totalorder %s655_s6, %s1079_s12  ;;  %p1084_p7 = scmp.lt.s32.totalorder %s655_s6, %s1436_s4 }
 0x281   : > { %p1085_p6 = scmp.lt.s32.totalorder %s1083_s23, %s1079_s12 }
 0x282   : > { %p1081_p4 = pnand %p1080_p2, %p1211_p5 }
 0x283   : > { %p1086_p9 = por %p1085_p6, %p1084_p7 }
 0x284   : > { %p1082_p13 = pneg %p1081_p4 }
 0x286   : > { %p1087_p10 = pnand %p1086_p9, %p1082_p13 }
 0x288   : > { %1090 = shalt.err (!%p1087_p10)
}
 0x289   : > { %878 = dma.vmem_to_hbm [thread:$0]  (%p1211_p5), %s658_s13, 16, %s655_s6, %s628_s7   ;;  %v495_v19 = vsub.f32 %v1305_v51, %v1310_v54  ;;  %v496_v41 = vsub.f32 %v1307_v53, %v1315_v58  ;;  %v485_v44 = vpop.xlane.xlu0 %484  ;;  %v567_v61 = vlaneseq  ;;  %vm590_vm11 = vcmask 64512  }
 0x28a   : > { %s790_s25 = sshll.u32 %s1194_s19, 1 }
 0x28b   : > { %v497_v22 = vmul.f32 1.442695, %v495_v19  ;;  %v499_v42 = vmul.f32 1.442695, %v496_v41  ;;  %p223_p5 = scmp.lt.s32.totalorder %s790_s25, 7  ;;  %v568_v2 = vand.u32 127, %v567_v61 }
 0x28c   : > { %v482_v43 = vpop.xlane.xlu1 %481 }
 0x28d   : > { %971 = vpow2.f32 %v497_v22  ;;  %vm572_vm4 = vcmp.eq.s32.totalorder %v568_v2, 1  ;;  %s1452_s25 = smov (!%p223_p5, %s790_s25), 7  ;;  %vm569_vm5 = vcmp.eq.s32.totalorder %v568_v2, 0  ;;  %vm575_vm6 = vcmp.eq.s32.totalorder %v568_v2, 2 }
 0x28e   : > { %973 = vpow2.f32 %v499_v42  ;;  %vm578_vm7 = vcmp.eq.s32.totalorder %v568_v2, 3  ;;  %vm581_vm8 = vcmp.eq.s32.totalorder %v568_v2, 4  ;;  %s791_s19 = sshll.u32 %s1452_s25, 3  ;;  %vm584_vm9 = vcmp.eq.s32.totalorder %v568_v2, 5 }
 0x28f   : > { %975 = vlog2.f32 %v482_v43  ;;  %vm587_vm10 = vcmp.eq.s32.totalorder %v568_v2, 6  ;;  %s226_s14 = scalar_lea.vmem %s1434_s2, %s791_s19 }
 0x290   : > { %977 = vlog2.f32 %v485_v44 }
 0x29a   : > { %v972_v45 = vpop.eup %971 }
 0x29b   : > { %v501_v46 = vmul.f32 %v972_v45, %v482_v43  ;;  %v974_v49 = vpop.eup %973 }
 0x29c   : > { %v502_v50 = vmul.f32 %v974_v49, %v485_v44  ;;  %v976_v59 = vpop.eup %975 }
 0x29d   : > { %v526_v62 = vmul.f32 0.6931472, %v976_v59  ;;  %v978_v0 = vpop.eup %977 }
 0x29e   : > { %v528_v5 = vmul.f32 0.6931472, %v978_v0 }
 0x29f   : > { %v529_v4 = vadd.f32 %v526_v62, %v1305_v51 }
 0x2a0   : > { %v530_v21 = vadd.f32 %v528_v5, %v1307_v53 }
 0x2a1   : > { %v570_v16 = vsel %vm569_vm5, %v529_v4, 0.0 }
 0x2d8   : > { %v519_v47 = vpop.xlane.xlu0 %518 }
 0x2d9   : > { %v523_v48 = vadd.f32 %v519_v47, %v501_v46 }
 0x2db   : > { %979 = vlog2.f32 %v523_v48 }
 0x2dc   : > { %v551_v52 = vpop.xlane.xlu0 %550  ;;  %v522_v55 = vpop.xlane.xlu1 %521 }
 0x2dd   : > { %981 = vlog2.f32 %v551_v52  ;;  %v524_v56 = vadd.f32 %v522_v55, %v502_v50 }
 0x2df   : > { %983 = vlog2.f32 %v524_v56 }
 0x2e0   : > { %v448_v57 = vpop.xlane.xlu0 %447  ;;  %v554_v60 = vpop.xlane.xlu1 %553 }
 0x2e1   : > { %985 = vlog2.f32 %v554_v60 }
 0x2e4   : > { %v450_v63 = vpop.xlane.xlu1 %449  ;;  %v456_v1 = vpop.xlane.xlu0 %455 }
 0x2e8   : > { %v980_v3 = vpop.eup %979  ;;  %v458_v13 = vpop.xlane.xlu1 %457 }
 0x2e9   : > { %v532_v6 = vmul.f32 0.6931472, %v980_v3  ;;  %v464_v18 = vpop.xlane.xlu0 %463 }
 0x2ea   : > { %v982_v8 = vpop.eup %981 }
 0x2eb   : > { %v535_v11 = vadd.f32 %v532_v6, %v1310_v54  ;;  %v556_v12 = vmul.f32 0.6931472, %v982_v8 }
 0x2ec   : > { %v984_v20 = vpop.eup %983  ;;  %v466_v27 = vpop.xlane.xlu1 %465 }
 0x2ed   : > { %v559_v15 = vadd.f32 %v556_v12, %v1325_v7  ;;  %v573_v51 = vsel %vm572_vm4, %v535_v11, %v570_v16  ;;  %v534_v23 = vmul.f32 0.6931472, %v984_v20  ;;  %v571_v7 = vsel %vm569_vm5, %v530_v21, 0.0  ;;  %v563_v30 = vpop.xlane.xlu0 %562 }
 0x2ee   : > { %v986_v24 = vpop.eup %985 }
 0x2ef   : > { %v576_v54 = vsel %vm575_vm6, %v559_v15, %v573_v51  ;;  %v536_v17 = vadd.f32 %v534_v23, %v1315_v58  ;;  %v558_v26 = vmul.f32 0.6931472, %v986_v24 }
 0x2f0   : > { %v579_v25 = vsel %vm578_vm7, %v448_v57, %v576_v54  ;;  %v566_v36 = vpop.xlane.xlu1 %565 }
 0x2f1   : > { %v582_v53 = vsel %vm581_vm8, %v456_v1, %v579_v25  ;;  %v560_v28 = vadd.f32 %v558_v26, %v1329_v9  ;;  %v574_v29 = vsel %vm572_vm4, %v536_v17, %v571_v7 }
 0x2f2   : > { %v585_v58 = vsel %vm584_vm9, %v464_v18, %v582_v53 }
 0x2f3   : > { %v588_v31 = vsel %vm587_vm10, %v563_v30, %v585_v58  ;;  %v577_v32 = vsel %vm575_vm6, %v560_v28, %v574_v29 }
 0x2f4   : > { %591 = vst.msk [vmem:[%s226_s14] sm:$0xff] %vm590_vm11, %v588_v31  ;;  %v580_v33 = vsel %vm578_vm7, %v450_v63, %v577_v32 }
 0x2f5   : > { %v583_v34 = vsel %vm581_vm8, %v458_v13, %v580_v33 }
 0x2f6   : > { %v586_v35 = vsel %vm584_vm9, %v466_v27, %v583_v34 }
 0x2f7   : > { %v589_v37 = vsel %vm587_vm10, %v566_v36, %v586_v35 }
 0x2f8   : > { %592 = vst.msk [vmem:[%s226_s14 + $0x8] sm:$0xff] %vm590_vm11, %v589_v37 }
 0x2f9 PF: > { %p899_p12 = scmp.ge.s32.totalorder %s1137_s18, 2  ;;  %s677_s22 = sand.u32 1, %s1125_s15  }
 0x2fa   : > { %p1446_p8 = scmp.ne.s32.totalorder %s1439_s26, 0  ;;  %s678_s28 = scalar_lea.sflag [#allocation4], %s677_s22 }
 0x2fc   : > { %p889_p11 = pnand %p899_p12, %p1446_p8 }
 0x2fe   : > { %p890_p0 = pneg %p889_p11 }
 0x300   : > { %1116 = dma.done.wait (%p890_p0), %s678_s28, 16  }
 0x301   : > { %1118 = vsyncadd (%p890_p0), %s678_s28, 4294967280  ;;  %s686_s6 = scalar_lea.sflag [#allocation9], %s677_s22 }
 0x302   : > { %1120 = dma.done.wait (%p890_p0), %s686_s6, 16  }
 0x303   : > { %1122 = vsyncadd (%p890_p0), %s686_s6, 4294967280  ;;  %p20_p1 = scmp.ge.s32.totalorder %s1198_s21, 6   ;;  %s1447_s15 = smov %s1129_s16 }
 0x304   : > { %s1448_s16 = smov %s1133_s17  ;;  %s1449_s17 = smov %s1209_s24 }
 0x305   : > { %s1450_s18 = smov %s1198_s21  ;;  %22 = sbr.rel (!%p20_p1) target bundleno = 7 (0x7), region = 102 }
 0x30a   :  { %690 = vsyncpa [#allocation3], 1 }
 0x30b   :  { %692 = vsyncpa [#allocation3 + $0x1], 1 }
 0x30c   :  { %693 = vsyncpa [#allocation6], 1 }
 0x30d   :  { %694 = vsyncpa [#allocation4], 1 }
 0x30e   :  { %696 = vsyncpa [#allocation4 + $0x1], 1 }
 0x30f   :  { %697 = vsyncpa [#allocation9], 1 }
 0x310   :  { %699 = vsyncpa [#allocation9 + $0x1], 1 }

// kernel: tpu_custom_call.1
= control target key start
LH: loop header
LB: loop body
LE: loop exit
PB: predicated region body
PF: predicated region fallthrough
CT: control target
= control target key end

     0   :  { %10 = vsyncpa [#allocation3], 0  ;;  %s1432_s0 = inlined_call_operand.hbm [shape: bf16[128,128], index: 0, kind: input, shape index: {}]   ;;  %s1433_s1 = inlined_call_operand.hbm [shape: bf16[128,128], index: 1, kind: input, shape index: {}]   ;;  %s1434_s2 = inlined_call_operand.vmem [shape: f32[64,8], index: 2, kind: output, shape index: {0}]   ;;  %s1435_s3 = inlined_call_operand.hbm [shape: f32[4,1,64], index: 3, kind: output, shape index: {1}]   ;;  %s1436_s4 = inlined_call_operand.hbm [shape: f32[4,1,64], index: 4, kind: output, shape index: {2}]  }
   0x1   :  { %11 = vsyncpa [#allocation6], 0 }
   0x2   :  { %12 = vsyncpa [#allocation4], 0 }
   0x3   :  { %14 = vsyncpa [#allocation4 + $0x1], 0 }
   0x4   :  { %15 = vsyncpa [#allocation9], 0 }
   0x5   :  { %17 = vsyncpa [#allocation9 + $0x1], 0  ;;  %s1173_s15 = smov 0   ;;  %s1175_s16 = smov 0  }
   0x6   :  { %s1177_s17 = smov 0   ;;  %s1179_s18 = smov 0  }
   0x7 LB: > { %s1194_s19 = sadd.s32 4294967295, %s1137_s18   ;;  %s783_s20 = sadd.s32 4294967294, %s1137_s18   ;;  %s1137_s18 = sphi %s1179_s18, %s1450_s18   ;;  %s1133_s17 = sphi %s1177_s17, %s1449_s17   ;;  %s1129_s16 = sphi %s1175_s16, %s1448_s16   ;;  %s1125_s15 = sphi %s1173_s15, %s1447_s15  }
   0x8   : > { %s1198_s21 = sadd.s32 1, %s1137_s18   ;;  %s98_s22 = sadd.s32 1, %s1133_s17 }
   0x9   : > { %s95_s23 = ssub.s32 %s1137_s18, %s1198_s21  ;;  %p108_p0 = scmp.ne.s32.totalorder %s1133_s17, %s1129_s16 }
   0xa   : > { %p96_p1 = scmp.eq.s32.totalorder %s95_s23, 0  ;;  %p109_p2 = scmp.eq.s32.totalorder %s1194_s19, 3 }
   0xb   : > { %p114_p3 = scmp.ne.s32.totalorder %s1129_s16, %s1125_s15  ;;  %p115_p4 = scmp.eq.s32.totalorder %s783_s20, 3 }
   0xc   : > { %s1209_s24 = scalar_select %p96_p1, %s1133_s17, %s98_s22  }
   0xd   : > { %p1211_p5 = por %p109_p2, %p108_p0  ;;  %p1215_p6 = por %p115_p4, %p114_p3 }
   0xe   : > { %p784_p7 = scmp.ge.s32.totalorder %s1137_s18, 1  ;;  %p148_p8 = scmp.lt.s32.totalorder %s1137_s18, 5 }
   0xf   : > { %s1439_s26 = scalar_select %p1215_p6, 1, 0 }
  0x10   : > { %p1437_p9 = scmp.eq.s32.totalorder %s1194_s19, 0  ;;  %p1222_p10 = pnand %p784_p7, %p148_p8 }
  0x11   : > { %s1139_s28 = smov [#allocation2]   ;;  %s1140_s5 = smov [#allocation5]  }
  0x12   : > { %s160_s29 = sshll.u32 %s1139_s28, 4  ;;  %p881_p11 = pneg %p1222_p10  ;;  %s161_s29 = int_to_ptr.vmem [resolvable:$true] %s160_s29 }
  0x13   : > { %s173_s6 = sshll.u32 %s1140_s5, 4  ;;  %s998_s7 = scalar_lea.vmem %s161_s29, 1024  ;;  %s174_s6 = int_to_ptr.vmem [resolvable:$true] %s173_s6 }
  0x14   : > { %p1230_p12 = pnand %p1437_p9, %p881_p11  ;;  %p999_p0 = scmp.ne.s32.totalorder %s161_s29, %s998_s7 }
  0x15   : > { %p1006_p3 = scmp.lt.s32.totalorder %s161_s29, %s161_s29  ;;  %p1007_p4 = scmp.lt.s32.totalorder %s998_s7, %s998_s7 }
  0x16   : > { %p989_p13 = pneg %p1230_p12 }
  0x17   : > { %p1008_p7 = por %p1007_p4, %p1006_p3 }
  0x18   : > { %p1001_p1 = pnand %p999_p0, %p989_p13 }
  0x1a   : > { %p1002_p2 = pneg %p1001_p1 }
  0x1c   : > { %p1009_p8 = pnand %p1008_p7, %p1002_p2 }
  0x1e   : > { %1012 = shalt.err (!%p1009_p8)
}
  0x1f   : > { %s1141_s8 = smov 64   ;;  %s1142_s9 = smov 4  }
  0x20   : > { %884 = dma.hbm_to_vmem [thread:$0]  (!%p1230_p12), %s1432_s0, 1024, %s161_s29, [#allocation3], %s1141_s8, %s1141_s8, %s1142_s9  }
  0x21   : > { %s1024_s12 = scalar_lea.vmem %s174_s6, 1024  ;;  %p1032_p9 = scmp.lt.s32.totalorder %s174_s6, %s174_s6 }
  0x22   : > { %p1025_p11 = scmp.ne.s32.totalorder %s174_s6, %s1024_s12  ;;  %p1033_p6 = scmp.lt.s32.totalorder %s1024_s12, %s1024_s12 }
  0x24   : > { %p1027_p0 = pnand %p1025_p11, %p989_p13  ;;  %p1034_p3 = por %p1033_p6, %p1032_p9 }
  0x26   : > { %p1028_p1 = pneg %p1027_p0 }
  0x28   : > { %p1035_p2 = pnand %p1034_p3, %p1028_p1 }
  0x2a   : > { %1038 = shalt.err (!%p1035_p2)
}
  0x2b   : > { %887 = dma.hbm_to_vmem [thread:$0]  (!%p1230_p12), %s1433_s1, 1024, %s174_s6, [#allocation6], %s1141_s8, %s1141_s8, %s1142_s9  }
  0x2c   : > { %189 = sbr.rel (%p1222_p10) target bundleno = 761 (0x2f9), region = 28  ;;  %p1442_p4 = scmp.eq.s32.totalorder (!%p1222_p10), %s1194_s19, 0 }
  0x31   : > { %1108 = dma.done.wait (%p1442_p4), [#allocation3], 1024   ;;  %p1443_p13 = pmov %p1442_p4 }
  0x32   : > { %p1444_p7 = pmov %p1442_p4 }
  0x33   : > { %1110 = vsyncadd (%p1443_p13), [#allocation3], 4294966272 }
  0x34   : > { %1112 = dma.done.wait (%p1444_p7), [#allocation6], 1024   ;;  %p1445_p6 = pmov %p1442_p4 }
  0x35   : > { %v1143_v0 = vmov 0.0   ;;  %vm1144_vm0 = vmmov 0   ;;  %v939_v1 = vld [vmem:[#allocation5 + $0x38] sm:$0xff]   ;;  %v940_v2 = vld [vmem:[#allocation5 + $0x30] sm:$0xff]   ;;  %v941_v5 = vld [vmem:[#allocation5 + $0x28] sm:$0xff]   ;;  %s1263_s20 = sshll.u32 %s1194_s19, 4 }
  0x36   : > { %1114 = vsyncadd (%p1445_p6), [#allocation6], 4294966272  ;;  %837 = vmatprep.subr.bf16.mxu0 %v1143_v0  ;;  %857 = vmatprep.subr.bf16.mxu1 %v1143_v0  ;;  %v945_v3 = vld [vmem:[#allocation2 + $0x38] sm:$0xff]   ;;  %v947_v4 = vld [vmem:[#allocation2 + $0x30] sm:$0xff]   ;;  %s231_s22 = sshra.s32 %s1263_s20, 3  ;;  %vm467_vm1 = vcmask 523264  }
  0x37   : > { %853 = vmatprep.mubr.msk.bf16.mxu0 %vm1144_vm0, %v1143_v0  ;;  %865 = vmatprep.mubr.msk.bf16.mxu1 %vm1144_vm0, %v1143_v0  ;;  %v949_v6 = vld [vmem:[#allocation2 + $0x28] sm:$0xff]   ;;  %v942_v7 = vld [vmem:[#allocation5 + $0x20] sm:$0xff]   ;;  %s793_s23 = sshll.u32 %s231_s22, 2  ;;  %v943_v9 = vld [vmem:[#allocation5 + $0x18] sm:$0xff]   ;;  %vm486_vm2 = vcmask 1048064   ;;  %s1291_s29 = sand.u32 1, %s1129_s16  }
  0x38   : > { %838 = vmatpush3.bf16.xpose.msra.mxu0 %v939_v1  ;;  %858 = vmatpush3.bf16.xpose.msra.mxu1 %v945_v3  ;;  %v951_v8 = vld [vmem:[#allocation2 + $0x20] sm:$0xff]   ;;  %s244_s27 = scalar_lea.vmem [#allocation5], %s793_s23  ;;  %v944_v11 = vld [vmem:[#allocation5 + $0x10] sm:$0xff]   ;;  %v946_v12 = vld [vmem:[#allocation5 + $0x8] sm:$0xff]   ;;  %s234_s28 = scalar_lea.vmem [#allocation2], %s793_s23  ;;  %vm615_vm3 = vcmask 516096  }
  0x39   : > { %839 = vmatprep.subr.bf16.mxu0 %v1143_v0  ;;  %859 = vmatprep.subr.bf16.mxu1 %v1143_v0  ;;  %v1266_v10 = vld [vmem:[%s244_s27] sm:$0xff]   ;;  %s215_s30 = scalar_lea.vmem [#allocation7], %s1291_s29  ;;  %s221_s5 = scalar_lea.vmem [#allocation8], %s1291_s29 }
  0x3a   : > { %v948_v13 = vld [vmem:[#allocation5] sm:$0xff]   ;;  %s1145_s6 = smov 64   ;;  %s230_s7 = sadd.s32 64, %s1263_s20 }
  0x3b   : > { %v1269_v14 = vld [vmem:[%s234_s28] sm:$0xff]   ;;  %s237_s8 = sshra.s32 %s230_s7, 3  ;;  %s644_s12 = sshll.u32 %s215_s30, 4  ;;  %s645_s12 = int_to_ptr.vmem [resolvable:$true] %s644_s12 }
  0x3c   : > { %s794_s9 = sshll.u32 %s237_s8, 2  ;;  %s1350_s13 = sshll.u32 %s221_s5, 4  ;;  %s658_s13 = int_to_ptr.vmem [resolvable:$true] %s1350_s13 }
  0x3d   : > { %s248_s10 = scalar_lea.vmem [#allocation5], %s794_s9  ;;  %s240_s11 = scalar_lea.vmem [#allocation2], %s794_s9 }
  0x3e   : > { %s642_s23 = scalar_lea.hbm %s1435_s3, %s1263_s20  ;;  %s624_s27 = scalar_lea.sflag [#allocation4], %s1291_s29 }
  0x3f   : > { %s1039_s28 = scalar_lea.vmem %s645_s12, 16 }
  0x40   : > { %840 = vmatpush3.bf16.xpose.msra.mxu0 %v940_v2  ;;  %860 = vmatpush3.bf16.xpose.msra.mxu1 %v947_v4  ;;  %p1040_p9 = scmp.ne.s32.totalorder %s645_s12, %s1039_s28 }
  0x41   : > { %841 = vmatprep.subr.bf16.mxu0 %v1143_v0  ;;  %861 = vmatprep.subr.bf16.mxu1 %v1143_v0 }
  0x42   : > { %p1041_p10 = pnand %p1040_p9, %p1211_p5 }
  0x44   : > { %p1042_p12 = pneg %p1041_p10 }
  0x48   : > { %842 = vmatpush3.bf16.xpose.msra.mxu0 %v941_v5  ;;  %862 = vmatpush3.bf16.xpose.msra.mxu1 %v949_v6 }
  0x49   : > { %843 = vmatprep.subr.bf16.mxu0 %v1143_v0  ;;  %863 = vmatprep.subr.bf16.mxu1 %v1143_v0 }
  0x50   : > { %844 = vmatpush3.bf16.xpose.msra.mxu0 %v942_v7  ;;  %864 = vmatpush3.bf16.xpose.msra.mxu1 %v951_v8 }
  0x51   : > { %845 = vmatprep.subr.bf16.mxu0 %v1143_v0 }
  0x57   : > { %866 = vmatmul.mubr.bf16.vlgmr.msra.gmra.mxu1 %v1266_v10 }
  0x58   : > { %846 = vmatpush3.bf16.xpose.msra.mxu0 %v943_v9 }
  0x59   : > { %847 = vmatprep.subr.bf16.mxu0 %v1143_v0 }
  0x60   : > { %848 = vmatpush3.bf16.xpose.msra.mxu0 %v944_v11 }
  0x61   : > { %849 = vmatprep.subr.bf16.mxu0 %v1143_v0 }
  0x68   : > { %850 = vmatpush3.bf16.xpose.msra.mxu0 %v946_v12 }
  0x69   : > { %851 = vmatprep.subr.bf16.mxu0 %v1143_v0 }
  0x70   : > { %852 = vmatpush3.bf16.xpose.msra.mxu0 %v948_v13 }
  0x77   : > { %854 = vmatmul.mubr.bf16.vlgmr.msra.gmra.mxu0 %v1269_v14 }
 0x117   : > { %v1272_v15 = vpop.f32.mrf.mxu1 }
 0x118   : > { %v537_v27 = vsel %vm467_vm1, %v1272_v15, -inf }
 0x119   : > { %v867_v16 = vpop.f32.mrf.mxu1 }
 0x11b   : > { %v1274_v17 = vpop.f32.mrf.mxu1 }
 0x11c   : > { %v540_v31 = vsel %vm467_vm1, %v1274_v17, -inf }
 0x11d   : > { %v868_v18 = vpop.f32.mrf.mxu1 }
 0x137   : > { %v1276_v19 = vpop.f32.mrf.mxu0 }
 0x138   : > { %v468_v20 = vsel %vm467_vm1, %v1276_v19, -inf  ;;  %v487_v23 = vsel %vm486_vm2, %v1276_v19, -inf }
 0x139   : > { %469 = vmax.xlane.f32.xlu0 %v468_v20  ;;  %v855_v21 = vpop.f32.mrf.mxu0 }
 0x13a   : > { %v441_v21 = vunpack.c.l.bf16 %v1269_v14 }
 0x13b   : > { %v1280_v22 = vpop.f32.mrf.mxu0 }
 0x13c   : > { %v471_v24 = vsel %vm467_vm1, %v1280_v22, -inf  ;;  %v490_v29 = vsel %vm486_vm2, %v1280_v22, -inf }
 0x13d   : > { %488 = vmax.xlane.f32.xlu0 %v487_v23  ;;  %472 = vmax.xlane.f32.xlu1 %v471_v24  ;;  %v593_v25 = vmax.f32 %v468_v20, %v471_v24  ;;  %v856_v26 = vpop.f32.mrf.mxu0  ;;  %v820_v23 = vld [vmem:[%s248_s10] sm:$0xff]  }
 0x13f   : > { %v594_v28 = vrot.slane %v593_v25, 4 }
 0x141   : > { %v595_v30 = vmax.f32 %v593_v25, %v594_v28  ;;  %538 = vmax.xlane.f32.xlu0 %v537_v27  ;;  %491 = vmax.xlane.f32.xlu1 %v490_v29  ;;  %v821_v27 = vunpack.c.l.bf16 %v820_v23  ;;  %v442_v29 = vunpack.c.h.bf16 %v1269_v14 }
 0x143   : > { %v596_v32 = vrot.slane %v595_v30, 2 }
 0x145   : > { %v597_v33 = vmax.f32 %v595_v30, %v596_v32  ;;  %541 = vmax.xlane.f32.xlu1 %v540_v31  ;;  %v444_v30 = vunpack.c.h.bf16 %v1266_v10  ;;  %v816_v31 = vld [vmem:[%s240_s11] sm:$0xff]  }
 0x147   : > { %v598_v34 = vrot.slane %v597_v33, 1 }
 0x149   : > { %v599_v35 = vmax.f32 %v597_v33, %v598_v34  ;;  %v453_v33 = vmul.f32 %v821_v27, %v441_v21  ;;  %v817_v34 = vunpack.c.l.bf16 %v816_v31 }
 0x14b   : > { %v600_v36 = vsub.f32 %v1276_v19, %v599_v35  ;;  %v601_v37 = vsub.f32 %v1280_v22, %v599_v35  ;;  %616 = vst.msk [vmem:[%s215_s30] sm:$0x1] %vm615_vm3, %v599_v35  ;;  %v446_v35 = vmul.f32 %v444_v30, %v442_v29 }
 0x14d   : > { %v602_v38 = vmul.f32 1.442695, %v600_v36  ;;  %v604_v39 = vmul.f32 1.442695, %v601_v37  ;;  %v822_v36 = vunpack.c.h.bf16 %v820_v23 }
 0x14f   : > { %955 = vpow2.f32 %v602_v38  ;;  %v454_v14 = vmul.f32 %v822_v36, %v442_v29  ;;  %v818_v38 = vunpack.c.h.bf16 %v816_v31 }
 0x150   : > { %957 = vpow2.f32 %v604_v39  ;;  %v561_v39 = vsel %vm467_vm1, %v1276_v19, 0.0 }
 0x15c   : > { %v956_v40 = vpop.eup %955 }
 0x15d   : > { %v958_v41 = vpop.eup %957  ;;  %v606_v42 = vsel %vm467_vm1, %v956_v40, 0.0  ;;  %v564_v40 = vsel %vm467_vm1, %v1280_v22, 0.0 }
 0x15e   : > { %v607_v43 = vsel %vm467_vm1, %v958_v41, 0.0 }
 0x15f   : > { %v608_v44 = vadd.f32 %v607_v43, %v606_v42 }
 0x161   : > { %v609_v45 = vrot.slane %v608_v44, 4 }
 0x163   : > { %v610_v46 = vadd.f32 %v609_v45, %v608_v44 }
 0x165   : > { %v611_v47 = vrot.slane %v610_v46, 2 }
 0x167   : > { %v612_v48 = vadd.f32 %v611_v47, %v610_v46 }
 0x169   : > { %v613_v49 = vrot.slane %v612_v48, 1 }
 0x16b   : > { %v614_v50 = vadd.f32 %v613_v49, %v612_v48 }
 0x16d   : > { %617 = vst.msk [vmem:[%s221_s5] sm:$0x1] %vm615_vm3, %v614_v50 }
 0x1c2   : > { %v1305_v51 = vpop.xlane.xlu0 %469 }
 0x1c3   : > { %v474_v1 = vsub.f32 %v1276_v19, %v1305_v51 }
 0x1c5   : > { %v476_v2 = vmul.f32 1.442695, %v474_v1 }
 0x1c6   : > { %v489_v52 = vpop.xlane.xlu0 %488  ;;  %v1307_v53 = vpop.xlane.xlu1 %472 }
 0x1c7   : > { %v1310_v54 = vmax.f32 %v1305_v51, %v489_v52  ;;  %v475_v63 = vsub.f32 %v1280_v22, %v1307_v53 }
 0x1c9   : > { %v503_v55 = vsub.f32 %v1276_v19, %v1310_v54  ;;  %v478_v0 = vmul.f32 1.442695, %v475_v63 }
 0x1ca   : > { %v492_v56 = vpop.xlane.xlu1 %491  ;;  %v1325_v7 = vpop.xlane.xlu0 %538 }
 0x1cb   : > { %v505_v57 = vmul.f32 1.442695, %v503_v55  ;;  %v1315_v58 = vmax.f32 %v1307_v53, %v492_v56  ;;  %v543_v8 = vsub.f32 %v1272_v15, %v1325_v7  ;;  %v443_v15 = vunpack.c.l.bf16 %v1266_v10 }
 0x1cc   : > { %v462_v10 = vmul.f32 %v818_v38, %v444_v30 }
 0x1cd   : > { %959 = vpow2.f32 %v505_v57  ;;  %v504_v59 = vsub.f32 %v1280_v22, %v1315_v58  ;;  %v545_v11 = vmul.f32 1.442695, %v543_v8  ;;  %v445_v26 = vmul.f32 %v443_v15, %v441_v21 }
 0x1ce   : > { %v1329_v9 = vpop.xlane.xlu1 %541  ;;  %v461_v37 = vmul.f32 %v817_v34, %v443_v15 }
 0x1cf   : > { %v507_v60 = vmul.f32 1.442695, %v504_v59  ;;  %v544_v12 = vsub.f32 %v1274_v17, %v1329_v9 }
 0x1d1   : > { %961 = vpow2.f32 %v507_v60  ;;  %v547_v13 = vmul.f32 1.442695, %v544_v12 }
 0x1d2   : > { %963 = vpow2.f32 %v478_v0 }
 0x1d3   : > { %965 = vpow2.f32 %v476_v2 }
 0x1d4   : > { %967 = vpow2.f32 %v545_v11 }
 0x1d5   : > { %969 = vpow2.f32 %v547_v13 }
 0x1da   : > { %v960_v61 = vpop.eup %959 }
 0x1db   : > { %511 = vrot.lane.b32.xlu0 %v960_v61, %s1145_s6 }
 0x1de   : > { %v962_v62 = vpop.eup %961 }
 0x1df   : > { %513 = vrot.lane.b32.xlu1 %v962_v62, %s1145_s6  ;;  %v964_v3 = vpop.eup %963  ;;  %s1146_s6 = smov [#allocation7]  }
 0x1e0   : > { %v483_v4 = vsel %vm467_vm1, %v964_v3, 0.0  ;;  %v966_v5 = vpop.eup %965  ;;  %s1043_s7 = sshll.u32 %s1146_s6, 4  ;;  %s1044_s7 = int_to_ptr.vmem [resolvable:$false] %s1043_s7 }
 0x1e1   : > { %v480_v6 = vsel %vm467_vm1, %v966_v5, 0.0  ;;  %v968_v20 = vpop.eup %967  ;;  %s1045_s8 = scalar_lea.vmem %s1044_s7, 32  ;;  %p1046_p8 = scmp.lt.s32.totalorder %s645_s12, %s1044_s7 }
 0x1e2   : > { %v549_v17 = vsel %vm467_vm1, %v968_v20, 0.0  ;;  %v970_v28 = vpop.eup %969  ;;  %p1047_p11 = scmp.lt.s32.totalorder %s1045_s8, %s1039_s28 }
 0x1e3   : > { %v552_v32 = vsel %vm467_vm1, %v970_v28, 0.0 }
 0x1e4   : > { %p1048_p0 = por %p1047_p11, %p1046_p8 }
 0x1e6   : > { %p1049_p1 = pnand %p1048_p0, %p1042_p12 }
 0x1fa   : > { %484 = vadd.xlane.f32.xlu0 %v483_v4 }
 0x203   : > { %481 = vadd.xlane.f32.xlu1 %v480_v6 }
 0x24d   : > { %v512_v16 = vpop.permute.xlu0 %511 }
 0x24e   : > { %v517_v18 = vsel %vm467_vm1, %v512_v16, 0.0 }
 0x24f   : > { %518 = vadd.xlane.f32.xlu0 %v517_v18 }
 0x251   : > { %v514_v24 = vpop.permute.xlu1 %513 }
 0x252   : > { %v520_v25 = vsel %vm467_vm1, %v514_v24, 0.0 }
 0x253   : > { %550 = vadd.xlane.f32.xlu0 %v549_v17  ;;  %521 = vadd.xlane.f32.xlu1 %v520_v25 }
 0x257   : > { %447 = vadd.xlane.f32.xlu0 %v445_v26  ;;  %553 = vadd.xlane.f32.xlu1 %v552_v32 }
 0x25b   : > { %455 = vadd.xlane.f32.xlu0 %v453_v33  ;;  %449 = vadd.xlane.f32.xlu1 %v446_v35 }
 0x25f   : > { %463 = vadd.xlane.f32.xlu0 %v461_v37  ;;  %457 = vadd.xlane.f32.xlu1 %v454_v14 }
 0x263   : > { %562 = vadd.xlane.f32.xlu0 %v561_v39  ;;  %465 = vadd.xlane.f32.xlu1 %v462_v10 }
 0x267   : > { %565 = vadd.xlane.f32.xlu1 %v564_v40 }
 0x268   : > { %1052 = shalt.err (!%p1049_p1)
}
 0x269   : > { %s1053_s30 = scalar_lea.hbm %s642_s23, 16  ;;  %s1057_s10 = scalar_lea.hbm %s1435_s3, 64 }
 0x26a   : > { %p1054_p3 = scmp.ne.s32.totalorder %s642_s23, %s1053_s30  ;;  %p1058_p13 = scmp.lt.s32.totalorder %s642_s23, %s1435_s3 }
 0x26b   : > { %p1059_p7 = scmp.lt.s32.totalorder %s1057_s10, %s1053_s30 }
 0x26c   : > { %p1055_p2 = pnand %p1054_p3, %p1211_p5 }
 0x26d   : > { %p1060_p6 = por %p1059_p7, %p1058_p13 }
 0x26e   : > { %p1056_p4 = pneg %p1055_p2 }
 0x270   : > { %p1061_p9 = pnand %p1060_p6, %p1056_p4 }
 0x272   : > { %1064 = shalt.err (!%p1061_p9)
}
 0x273   : > { %877 = dma.vmem_to_hbm [thread:$0]  (%p1211_p5), %s645_s12, 16, %s642_s23, %s624_s27  }
 0x274   : > { %s655_s6 = scalar_lea.hbm %s1436_s4, %s1263_s20  ;;  %s628_s7 = scalar_lea.sflag [#allocation9], %s1291_s29 }
 0x275   : > { %s1065_s8 = scalar_lea.vmem %s658_s13, 16  ;;  %s1147_s30 = smov [#allocation8]  }
 0x276   : > { %p1066_p10 = scmp.ne.s32.totalorder %s658_s13, %s1065_s8  ;;  %s1069_s5 = sshll.u32 %s1147_s30, 4  ;;  %s1070_s5 = int_to_ptr.vmem [resolvable:$false] %s1069_s5 }
 0x277   : > { %s1071_s9 = scalar_lea.vmem %s1070_s5, 32  ;;  %p1072_p11 = scmp.lt.s32.totalorder %s658_s13, %s1070_s5 }
 0x278   : > { %p1067_p12 = pnand %p1066_p10, %p1211_p5  ;;  %p1073_p0 = scmp.lt.s32.totalorder %s1071_s9, %s1065_s8 }
 0x27a   : > { %p1068_p8 = pneg %p1067_p12  ;;  %p1074_p1 = por %p1073_p0, %p1072_p11 }
 0x27c   : > { %p1075_p3 = pnand %p1074_p1, %p1068_p8 }
 0x27e   : > { %1078 = shalt.err (!%p1075_p3)
}
 0x27f   : > { %s1079_s12 = scalar_lea.hbm %s655_s6, 16  ;;  %s1083_s23 = scalar_lea.hbm %s1436_s4, 64 }
 0x280   : > { %p1080_p2 = scmp.ne.s32.totalorder %s655_s6, %s1079_s12  ;;  %p1084_p7 = scmp.lt.s32.totalorder %s655_s6, %s1436_s4 }
 0x281   : > { %p1085_p6 = scmp.lt.s32.totalorder %s1083_s23, %s1079_s12 }
 0x282   : > { %p1081_p4 = pnand %p1080_p2, %p1211_p5 }
 0x283   : > { %p1086_p9 = por %p1085_p6, %p1084_p7 }
 0x284   : > { %p1082_p13 = pneg %p1081_p4 }
 0x286   : > { %p1087_p10 = pnand %p1086_p9, %p1082_p13 }
 0x288   : > { %1090 = shalt.err (!%p1087_p10)
}
 0x289   : > { %878 = dma.vmem_to_hbm [thread:$0]  (%p1211_p5), %s658_s13, 16, %s655_s6, %s628_s7   ;;  %v495_v19 = vsub.f32 %v1305_v51, %v1310_v54  ;;  %v496_v41 = vsub.f32 %v1307_v53, %v1315_v58  ;;  %v485_v44 = vpop.xlane.xlu0 %484  ;;  %v567_v61 = vlaneseq  ;;  %vm590_vm11 = vcmask 64512  }
 0x28a   : > { %s790_s25 = sshll.u32 %s1194_s19, 1 }
 0x28b   : > { %v497_v22 = vmul.f32 1.442695, %v495_v19  ;;  %v499_v42 = vmul.f32 1.442695, %v496_v41  ;;  %p223_p5 = scmp.lt.s32.totalorder %s790_s25, 7  ;;  %v568_v2 = vand.u32 127, %v567_v61 }
 0x28c   : > { %v482_v43 = vpop.xlane.xlu1 %481 }
 0x28d   : > { %971 = vpow2.f32 %v497_v22  ;;  %vm572_vm4 = vcmp.eq.s32.totalorder %v568_v2, 1  ;;  %s1452_s25 = smov (!%p223_p5, %s790_s25), 7  ;;  %vm569_vm5 = vcmp.eq.s32.totalorder %v568_v2, 0  ;;  %vm575_vm6 = vcmp.eq.s32.totalorder %v568_v2, 2 }
 0x28e   : > { %973 = vpow2.f32 %v499_v42  ;;  %vm578_vm7 = vcmp.eq.s32.totalorder %v568_v2, 3  ;;  %vm581_vm8 = vcmp.eq.s32.totalorder %v568_v2, 4  ;;  %s791_s19 = sshll.u32 %s1452_s25, 3  ;;  %vm584_vm9 = vcmp.eq.s32.totalorder %v568_v2, 5 }
 0x28f   : > { %975 = vlog2.f32 %v482_v43  ;;  %vm587_vm10 = vcmp.eq.s32.totalorder %v568_v2, 6  ;;  %s226_s14 = scalar_lea.vmem %s1434_s2, %s791_s19 }
 0x290   : > { %977 = vlog2.f32 %v485_v44 }
 0x29a   : > { %v972_v45 = vpop.eup %971 }
 0x29b   : > { %v501_v46 = vmul.f32 %v972_v45, %v482_v43  ;;  %v974_v49 = vpop.eup %973 }
 0x29c   : > { %v502_v50 = vmul.f32 %v974_v49, %v485_v44  ;;  %v976_v59 = vpop.eup %975 }
 0x29d   : > { %v526_v62 = vmul.f32 0.6931472, %v976_v59  ;;  %v978_v0 = vpop.eup %977 }
 0x29e   : > { %v528_v5 = vmul.f32 0.6931472, %v978_v0 }
 0x29f   : > { %v529_v4 = vadd.f32 %v526_v62, %v1305_v51 }
 0x2a0   : > { %v530_v21 = vadd.f32 %v528_v5, %v1307_v53 }
 0x2a1   : > { %v570_v16 = vsel %vm569_vm5, %v529_v4, 0.0 }
 0x2d8   : > { %v519_v47 = vpop.xlane.xlu0 %518 }
 0x2d9   : > { %v523_v48 = vadd.f32 %v519_v47, %v501_v46 }
 0x2db   : > { %979 = vlog2.f32 %v523_v48 }
 0x2dc   : > { %v551_v52 = vpop.xlane.xlu0 %550  ;;  %v522_v55 = vpop.xlane.xlu1 %521 }
 0x2dd   : > { %981 = vlog2.f32 %v551_v52  ;;  %v524_v56 = vadd.f32 %v522_v55, %v502_v50 }
 0x2df   : > { %983 = vlog2.f32 %v524_v56 }
 0x2e0   : > { %v448_v57 = vpop.xlane.xlu0 %447  ;;  %v554_v60 = vpop.xlane.xlu1 %553 }
 0x2e1   : > { %985 = vlog2.f32 %v554_v60 }
 0x2e4   : > { %v450_v63 = vpop.xlane.xlu1 %449  ;;  %v456_v1 = vpop.xlane.xlu0 %455 }
 0x2e8   : > { %v980_v3 = vpop.eup %979  ;;  %v458_v13 = vpop.xlane.xlu1 %457 }
 0x2e9   : > { %v532_v6 = vmul.f32 0.6931472, %v980_v3  ;;  %v464_v18 = vpop.xlane.xlu0 %463 }
 0x2ea   : > { %v982_v8 = vpop.eup %981 }
 0x2eb   : > { %v535_v11 = vadd.f32 %v532_v6, %v1310_v54  ;;  %v556_v12 = vmul.f32 0.6931472, %v982_v8 }
 0x2ec   : > { %v984_v20 = vpop.eup %983  ;;  %v466_v27 = vpop.xlane.xlu1 %465 }
 0x2ed   : > { %v559_v15 = vadd.f32 %v556_v12, %v1325_v7  ;;  %v573_v51 = vsel %vm572_vm4, %v535_v11, %v570_v16  ;;  %v534_v23 = vmul.f32 0.6931472, %v984_v20  ;;  %v571_v7 = vsel %vm569_vm5, %v530_v21, 0.0  ;;  %v563_v30 = vpop.xlane.xlu0 %562 }
 0x2ee   : > { %v986_v24 = vpop.eup %985 }
 0x2ef   : > { %v576_v54 = vsel %vm575_vm6, %v559_v15, %v573_v51  ;;  %v536_v17 = vadd.f32 %v534_v23, %v1315_v58  ;;  %v558_v26 = vmul.f32 0.6931472, %v986_v24 }
 0x2f0   : > { %v579_v25 = vsel %vm578_vm7, %v448_v57, %v576_v54  ;;  %v566_v36 = vpop.xlane.xlu1 %565 }
 0x2f1   : > { %v582_v53 = vsel %vm581_vm8, %v456_v1, %v579_v25  ;;  %v560_v28 = vadd.f32 %v558_v26, %v1329_v9  ;;  %v574_v29 = vsel %vm572_vm4, %v536_v17, %v571_v7 }
 0x2f2   : > { %v585_v58 = vsel %vm584_vm9, %v464_v18, %v582_v53 }
 0x2f3   : > { %v588_v31 = vsel %vm587_vm10, %v563_v30, %v585_v58  ;;  %v577_v32 = vsel %vm575_vm6, %v560_v28, %v574_v29 }
 0x2f4   : > { %591 = vst.msk [vmem:[%s226_s14] sm:$0xff] %vm590_vm11, %v588_v31  ;;  %v580_v33 = vsel %vm578_vm7, %v450_v63, %v577_v32 }
 0x2f5   : > { %v583_v34 = vsel %vm581_vm8, %v458_v13, %v580_v33 }
 0x2f6   : > { %v586_v35 = vsel %vm584_vm9, %v466_v27, %v583_v34 }
 0x2f7   : > { %v589_v37 = vsel %vm587_vm10, %v566_v36, %v586_v35 }
 0x2f8   : > { %592 = vst.msk [vmem:[%s226_s14 + $0x8] sm:$0xff] %vm590_vm11, %v589_v37 }
 0x2f9 PF: > { %p899_p12 = scmp.ge.s32.totalorder %s1137_s18, 2  ;;  %s677_s22 = sand.u32 1, %s1125_s15  }
 0x2fa   : > { %p1446_p8 = scmp.ne.s32.totalorder %s1439_s26, 0  ;;  %s678_s28 = scalar_lea.sflag [#allocation4], %s677_s22 }
 0x2fc   : > { %p889_p11 = pnand %p899_p12, %p1446_p8 }
 0x2fe   : > { %p890_p0 = pneg %p889_p11 }
 0x300   : > { %1116 = dma.done.wait (%p890_p0), %s678_s28, 16  }
 0x301   : > { %1118 = vsyncadd (%p890_p0), %s678_s28, 4294967280  ;;  %s686_s6 = scalar_lea.sflag [#allocation9], %s677_s22 }
 0x302   : > { %1120 = dma.done.wait (%p890_p0), %s686_s6, 16  }
 0x303   : > { %1122 = vsyncadd (%p890_p0), %s686_s6, 4294967280  ;;  %p20_p1 = scmp.ge.s32.totalorder %s1198_s21, 6   ;;  %s1447_s15 = smov %s1129_s16 }
 0x304   : > { %s1448_s16 = smov %s1133_s17  ;;  %s1449_s17 = smov %s1209_s24 }
 0x305   : > { %s1450_s18 = smov %s1198_s21  ;;  %22 = sbr.rel (!%p20_p1) target bundleno = 7 (0x7), region = 102 }
 0x30a   :  { %690 = vsyncpa [#allocation3], 1 }
 0x30b   :  { %692 = vsyncpa [#allocation3 + $0x1], 1 }
 0x30c   :  { %693 = vsyncpa [#allocation6], 1 }
 0x30d   :  { %694 = vsyncpa [#allocation4], 1 }
 0x30e   :  { %696 = vsyncpa [#allocation4 + $0x1], 1 }
 0x30f   :  { %697 = vsyncpa [#allocation9], 1 }
 0x310   :  { %699 = vsyncpa [#allocation9 + $0x1], 1 }

</bundles_post_ra>
